<compile_context>
chip_gen: v6e
topology: v6e:2x2x1
jax: 0.10.0
libtpu: 0.0.40
codegen_flags: <defaults>
</compile_context>

<pallas_src>
import functools

import jax
import jax.numpy as jnp
from jax.experimental import pallas as pl
from jax.experimental.pallas import tpu as pltpu


def _mha_kernel(x_ref,
                wqkv_ref, bqkv_ref,
                wo_ref, bo_ref,
                o_ref, *, num_heads, d_k, compute_dtype):
    x = x_ref[0].astype(compute_dtype)                  # (S, D)
    S = x.shape[0]
    D = wo_ref.shape[0]
    scale = 1.0 / (d_k ** 0.5)

    # Fused QKV projection: (S, D) @ (D, 3D) on the MXU, f32 accumulation,
    # f32 bias add.  Slices below are lane-aligned (D multiple of 128).
    qkv = jnp.dot(x, wqkv_ref[...],
                  preferred_element_type=jnp.float32) + bqkv_ref[...]
    q = (qkv[:, :D] * scale).astype(compute_dtype)       # scale folded into Q
    k = qkv[:, D:2 * D].astype(compute_dtype)
    v = qkv[:, 2 * D:].astype(compute_dtype)

    # Per-head attention (small static head loop; head slices are lane-aligned
    # when d_k is a multiple of 128, as in the example shapes).
    heads = []
    for h in range(num_heads):
        sl = slice(h * d_k, (h + 1) * d_k)

        # scores = (Qh / sqrt(d_k)) Kh^T, f32 accumulation on the MXU.
        s = jax.lax.dot_general(
            q[:, sl], k[:, sl], (((1,), (1,)), ((), ())),
            preferred_element_type=jnp.float32)          # (S, S)

        # numerically stable softmax in f32 (recip on the EUP slot).
        s = s - jnp.max(s, axis=-1, keepdims=True)
        p = jnp.exp(s)
        p = p * pl.reciprocal(jnp.sum(p, axis=-1, keepdims=True), approx=True)

        heads.append(jnp.dot(p.astype(compute_dtype), v[:, sl],
                             preferred_element_type=jnp.float32))  # (S, d_k)

    # combine_heads (+ output_linear): lane-aligned concat -> single MXU matmul.
    attn = jnp.concatenate(heads, axis=-1).astype(compute_dtype)   # (S, D)
    out = jnp.dot(attn, wo_ref[...],
                  preferred_element_type=jnp.float32) + bo_ref[...]
    o_ref[0] = out.astype(o_ref.dtype)


def multi_head_attention(seq_inputs, key, value, params, *, num_heads,
                         compute_dtype=jnp.bfloat16):
    """seq_inputs: [B, S, d_model] f32.  `key`/`value` unused (as in the module)."""
    del key, value                                      # module ignores them
    B, S, D = seq_inputs.shape
    assert D % num_heads == 0
    d_k = D // num_heads

    # Fuse Q/K/V weights/biases host-side: (D, 3D) weight, (1, 3D) bias.
    wqkv = jnp.concatenate(
        [params["wq"], params["wk"], params["wv"]], axis=1).astype(compute_dtype)
    bqkv = jnp.concatenate([params["bq"], params["bk"], params["bv"]], axis=1)
    wo = params["wo"].astype(compute_dtype)
    bo = params["bo"]

    x_spec = pl.BlockSpec((1, S, D), lambda b: (b, 0, 0))
    wqkv_spec = pl.BlockSpec((D, 3 * D), lambda b: (0, 0))   # constant -> fetched once
    bqkv_spec = pl.BlockSpec((1, 3 * D), lambda b: (0, 0))
    wo_spec = pl.BlockSpec((D, D), lambda b: (0, 0))
    bo_spec = pl.BlockSpec((1, D), lambda b: (0, 0))

    itemsize = jnp.dtype(compute_dtype).itemsize
    flops = B * (8 * S * D * D + 4 * S * S * D)
    bytes_accessed = (2 * B * S * D * 4                        # x in + out (f32)
                      + 4 * D * D * itemsize                   # W_qkv + W_o (bf16)
                      + 4 * D * 4)                             # biases (f32)
    cost = pl.CostEstimate(flops=flops,
                           transcendentals=B * num_heads * S * S,
                           bytes_accessed=bytes_accessed)

    kernel = functools.partial(_mha_kernel, num_heads=num_heads, d_k=d_k,
                               compute_dtype=compute_dtype)

    return pl.pallas_call(
        kernel,
        out_shape=jax.ShapeDtypeStruct((B, S, D), seq_inputs.dtype),
        grid_spec=pltpu.PrefetchScalarGridSpec(
            num_scalar_prefetch=0,
            grid=(B,),
            in_specs=[x_spec, wqkv_spec, bqkv_spec, wo_spec, bo_spec],
            out_specs=x_spec,
        ),
        compiler_params=pltpu.CompilerParams(
            dimension_semantics=("parallel",)),
        cost_estimate=cost,
    )(seq_inputs, wqkv, bqkv, wo, bo)


def init_params(key, d_model):
    """Synthetic params matching PyTorch nn.Linear default init (W stored (in, out))."""
    ks = jax.random.split(key, 8)
    s = 1.0 / (d_model ** 0.5)
    u = lambda k, shape: jax.random.uniform(k, shape, jnp.float32, -s, s)
    return {
        "wq": u(ks[0], (d_model, d_model)), "bq": u(ks[1], (1, d_model)),
        "wk": u(ks[2], (d_model, d_model)), "bk": u(ks[3], (1, d_model)),
        "wv": u(ks[4], (d_model, d_model)), "bv": u(ks[5], (1, d_model)),
        "wo": u(ks[6], (d_model, d_model)), "bo": u(ks[7], (1, d_model)),
    }


def _reference(x, p, num_heads):
    """Pure-JAX f32 reference of the same forward pass."""
    B, S, D = x.shape
    d_k = D // num_heads
    q = x @ p["wq"] + p["bq"]
    k = x @ p["wk"] + p["bk"]
    v = x @ p["wv"] + p["bv"]
    split = lambda t: t.reshape(B, S, num_heads, d_k).transpose(0, 2, 1, 3)
    qh, kh, vh = split(q), split(k), split(v)
    s = jnp.einsum("bhqd,bhkd->bhqk", qh, kh) / jnp.sqrt(jnp.float32(d_k))
    w = jax.nn.softmax(s, axis=-1)
    o = jnp.einsum("bhqk,bhkd->bhqd", w, vh)
    o = o.transpose(0, 2, 1, 3).reshape(B, S, D)
    return o @ p["wo"] + p["bo"]


if __name__ == "__main__":
    key = jax.random.PRNGKey(0)
    kx, kk, kv, kp = jax.random.split(key, 4)

    # Small but lane-dense shapes: d_model and seq multiples of 128.
    B, S, d_model, num_heads = 2, 128, 256, 2
    x = jax.random.normal(kx, (B, S, d_model), jnp.float32)
    # `key` / `value` tensors exist in the signature but are unused by forward().
    k_in = jax.random.normal(kk, (B, S, d_model), jnp.float32)
    v_in = jax.random.normal(kv, (B, S, d_model), jnp.float32)
    params = init_params(kp, d_model)

    out = multi_head_attention(x, k_in, v_in, params, num_heads=num_heads)
    out = jax.block_until_ready(out)

    ref = _reference(x, params, num_heads)
    assert out.shape == (B, S, d_model)
    # bf16 MXU operands with f32 accumulation -> loosened tolerance vs f32 reference.
    assert jnp.allclose(out, ref, atol=2e-2, rtol=2e-2), "mismatch vs reference"

    print("KERNEL_OK")
</pallas_src>

<mosaic_0001>
module attributes {stable_mosaic.version = 11 : i64} {
  func.func @_mha_kernel(%arg0: i32, %arg1: memref<1x128x256xf32, #tpu.memory_space<vmem>>, %arg2: memref<256x768xbf16, #tpu.memory_space<vmem>>, %arg3: memref<1x768xf32, #tpu.memory_space<vmem>>, %arg4: memref<256x256xbf16, #tpu.memory_space<vmem>>, %arg5: memref<1x256xf32, #tpu.memory_space<vmem>>, %arg6: memref<1x128x256xf32, #tpu.memory_space<vmem>>) attributes {dimension_semantics = [#tpu.dimension_semantics<parallel>], iteration_bounds = array<i64: 2>, scalar_prefetch = 0 : i64, scratch_operands = 0 : i64, tpu.core_type = #tpu.core_type<tc>, window_params = [{transform_indices = @transform_0, window_bounds = array<i64: 1, 128, 256>}, {pipeline_mode = #tpu.pipeline_mode<synchronous>, transform_indices = @transform_1, window_bounds = array<i64: 256, 768>}, {pipeline_mode = #tpu.pipeline_mode<synchronous>, transform_indices = @transform_2, window_bounds = array<i64: 1, 768>}, {pipeline_mode = #tpu.pipeline_mode<synchronous>, transform_indices = @transform_3, window_bounds = array<i64: 256, 256>}, {pipeline_mode = #tpu.pipeline_mode<synchronous>, transform_indices = @transform_4, window_bounds = array<i64: 1, 256>}, {transform_indices = @transform_5, window_bounds = array<i64: 1, 128, 256>}]} {
    %c0 = arith.constant 0 : index
    %c0_0 = arith.constant 0 : index
    %c0_1 = arith.constant 0 : index
    %0 = vector.load %arg1[%c0, %c0_0, %c0_1] : memref<1x128x256xf32, #tpu.memory_space<vmem>>, vector<1x128x256xf32>
    %1 = vector.shape_cast %0 : vector<1x128x256xf32> to vector<128x256xf32>
    %2 = arith.truncf %1 : vector<128x256xf32> to vector<128x256xbf16>
    %c0_2 = arith.constant 0 : index
    %c0_3 = arith.constant 0 : index
    %3 = vector.load %arg2[%c0_2, %c0_3] : memref<256x768xbf16, #tpu.memory_space<vmem>>, vector<256x768xbf16>
    %cst = arith.constant dense<0.000000e+00> : vector<128x768xf32>
    %4 = tpu.matmul %2, %3, %cst {dimension_numbers = #tpu.dot_dimension_numbers<[1], [0], [0], [1], [0, 0, 1, 1], [], []>} : vector<128x256xbf16>, vector<256x768xbf16>, vector<128x768xf32> -> vector<128x768xf32>
    %c0_4 = arith.constant 0 : index
    %c0_5 = arith.constant 0 : index
    %5 = vector.load %arg3[%c0_4, %c0_5] : memref<1x768xf32, #tpu.memory_space<vmem>>, vector<1x768xf32>
    %6 = vector.broadcast %5 : vector<1x768xf32> to vector<128x768xf32>
    %7 = arith.addf %4, %6 : vector<128x768xf32>
    %8 = vector.extract_strided_slice %7 {offsets = [0, 0], sizes = [128, 256], strides = [1, 1]} : vector<128x768xf32> to vector<128x256xf32>
    %cst_6 = arith.constant 0.0883883461 : f32
    %9 = vector.broadcast %cst_6 : f32 to vector<128x256xf32>
    %10 = arith.mulf %8, %9 : vector<128x256xf32>
    %11 = arith.truncf %10 : vector<128x256xf32> to vector<128x256xbf16>
    %12 = vector.extract_strided_slice %7 {offsets = [0, 256], sizes = [128, 256], strides = [1, 1]} : vector<128x768xf32> to vector<128x256xf32>
    %13 = arith.truncf %12 : vector<128x256xf32> to vector<128x256xbf16>
    %14 = vector.extract_strided_slice %7 {offsets = [0, 512], sizes = [128, 256], strides = [1, 1]} : vector<128x768xf32> to vector<128x256xf32>
    %15 = arith.truncf %14 : vector<128x256xf32> to vector<128x256xbf16>
    %16 = vector.extract_strided_slice %11 {offsets = [0, 0], sizes = [128, 128], strides = [1, 1]} : vector<128x256xbf16> to vector<128x128xbf16>
    %17 = vector.extract_strided_slice %13 {offsets = [0, 0], sizes = [128, 128], strides = [1, 1]} : vector<128x256xbf16> to vector<128x128xbf16>
    %cst_7 = arith.constant dense<0.000000e+00> : vector<128x128xf32>
    %18 = tpu.matmul %16, %17, %cst_7 {dimension_numbers = #tpu.dot_dimension_numbers<[1], [1], [0], [0], [0, 0, 1, 0], [], []>} : vector<128x128xbf16>, vector<128x128xbf16>, vector<128x128xf32> -> vector<128x128xf32>
    %cst_8 = arith.constant dense<0xFF800000> : vector<128xf32>
    %19 = vector.multi_reduction <maximumf>, %18, %cst_8 [1] : vector<128x128xf32> to vector<128xf32>
    %20 = vector.shape_cast %19 : vector<128xf32> to vector<128x1xf32>
    %21 = vector.broadcast %20 : vector<128x1xf32> to vector<128x128xf32>
    %22 = arith.subf %18, %21 : vector<128x128xf32>
    %23 = math.exp %22 : vector<128x128xf32>
    %cst_9 = arith.constant dense<0.000000e+00> : vector<128xf32>
    %24 = vector.multi_reduction <add>, %23, %cst_9 [1] : vector<128x128xf32> to vector<128xf32>
    %25 = vector.shape_cast %24 : vector<128xf32> to vector<128x1xf32>
    %26 = tpu.reciprocal %25 {approx = true} : vector<128x1xf32> -> vector<128x1xf32>
    %27 = vector.broadcast %26 : vector<128x1xf32> to vector<128x128xf32>
    %28 = arith.mulf %23, %27 : vector<128x128xf32>
    %29 = arith.truncf %28 : vector<128x128xf32> to vector<128x128xbf16>
    %30 = vector.extract_strided_slice %15 {offsets = [0, 0], sizes = [128, 128], strides = [1, 1]} : vector<128x256xbf16> to vector<128x128xbf16>
    %cst_10 = arith.constant dense<0.000000e+00> : vector<128x128xf32>
    %31 = tpu.matmul %29, %30, %cst_10 {dimension_numbers = #tpu.dot_dimension_numbers<[1], [0], [0], [1], [0, 0, 1, 1], [], []>} : vector<128x128xbf16>, vector<128x128xbf16>, vector<128x128xf32> -> vector<128x128xf32>
    %32 = vector.extract_strided_slice %11 {offsets = [0, 128], sizes = [128, 128], strides = [1, 1]} : vector<128x256xbf16> to vector<128x128xbf16>
    %33 = vector.extract_strided_slice %13 {offsets = [0, 128], sizes = [128, 128], strides = [1, 1]} : vector<128x256xbf16> to vector<128x128xbf16>
    %cst_11 = arith.constant dense<0.000000e+00> : vector<128x128xf32>
    %34 = tpu.matmul %32, %33, %cst_11 {dimension_numbers = #tpu.dot_dimension_numbers<[1], [1], [0], [0], [0, 0, 1, 0], [], []>} : vector<128x128xbf16>, vector<128x128xbf16>, vector<128x128xf32> -> vector<128x128xf32>
    %cst_12 = arith.constant dense<0xFF800000> : vector<128xf32>
    %35 = vector.multi_reduction <maximumf>, %34, %cst_12 [1] : vector<128x128xf32> to vector<128xf32>
    %36 = vector.shape_cast %35 : vector<128xf32> to vector<128x1xf32>
    %37 = vector.broadcast %36 : vector<128x1xf32> to vector<128x128xf32>
    %38 = arith.subf %34, %37 : vector<128x128xf32>
    %39 = math.exp %38 : vector<128x128xf32>
    %cst_13 = arith.constant dense<0.000000e+00> : vector<128xf32>
    %40 = vector.multi_reduction <add>, %39, %cst_13 [1] : vector<128x128xf32> to vector<128xf32>
    %41 = vector.shape_cast %40 : vector<128xf32> to vector<128x1xf32>
    %42 = tpu.reciprocal %41 {approx = true} : vector<128x1xf32> -> vector<128x1xf32>
    %43 = vector.broadcast %42 : vector<128x1xf32> to vector<128x128xf32>
    %44 = arith.mulf %39, %43 : vector<128x128xf32>
    %45 = arith.truncf %44 : vector<128x128xf32> to vector<128x128xbf16>
    %46 = vector.extract_strided_slice %15 {offsets = [0, 128], sizes = [128, 128], strides = [1, 1]} : vector<128x256xbf16> to vector<128x128xbf16>
    %cst_14 = arith.constant dense<0.000000e+00> : vector<128x128xf32>
    %47 = tpu.matmul %45, %46, %cst_14 {dimension_numbers = #tpu.dot_dimension_numbers<[1], [0], [0], [1], [0, 0, 1, 1], [], []>} : vector<128x128xbf16>, vector<128x128xbf16>, vector<128x128xf32> -> vector<128x128xf32>
    %48 = tpu.concatenate %31, %47 in 1 : vector<128x128xf32>, vector<128x128xf32> -> vector<128x256xf32>
    %49 = arith.truncf %48 : vector<128x256xf32> to vector<128x256xbf16>
    %c0_15 = arith.constant 0 : index
    %c0_16 = arith.constant 0 : index
    %50 = vector.load %arg4[%c0_15, %c0_16] : memref<256x256xbf16, #tpu.memory_space<vmem>>, vector<256x256xbf16>
    %cst_17 = arith.constant dense<0.000000e+00> : vector<128x256xf32>
    %51 = tpu.matmul %49, %50, %cst_17 {dimension_numbers = #tpu.dot_dimension_numbers<[1], [0], [0], [1], [0, 0, 1, 1], [], []>} : vector<128x256xbf16>, vector<256x256xbf16>, vector<128x256xf32> -> vector<128x256xf32>
    %c0_18 = arith.constant 0 : index
    %c0_19 = arith.constant 0 : index
    %52 = vector.load %arg5[%c0_18, %c0_19] : memref<1x256xf32, #tpu.memory_space<vmem>>, vector<1x256xf32>
    %53 = vector.broadcast %52 : vector<1x256xf32> to vector<128x256xf32>
    %54 = arith.addf %51, %53 : vector<128x256xf32>
    %c0_20 = arith.constant 0 : index
    %c0_21 = arith.constant 0 : index
    %c0_22 = arith.constant 0 : index
    %55 = vector.load %arg6[%c0_20, %c0_21, %c0_22] : memref<1x128x256xf32, #tpu.memory_space<vmem>>, vector<1x128x256xf32>
    %56 = vector.shape_cast %55 : vector<1x128x256xf32> to vector<128x256xf32>
    %57 = vector.shape_cast %54 : vector<128x256xf32> to vector<1x128x256xf32>
    tpu.vector_store %arg6[%c0_20, %c0_21, %c0_22], %57 {strides = array<i32>} : memref<1x128x256xf32, #tpu.memory_space<vmem>>, vector<1x128x256xf32>,
    return
  }
  func.func @transform_0(%arg0: i32) -> (i32, i32, i32) {
    %c0_i32 = arith.constant 0 : i32
    %c0_i32_0 = arith.constant 0 : i32
    %c0_i32_1 = arith.constant 0 : i32
    return %arg0, %c0_i32, %c0_i32_0 : i32, i32, i32
  }
  func.func @transform_1(%arg0: i32) -> (i32, i32) {
    %c0_i32 = arith.constant 0 : i32
    %c0_i32_0 = arith.constant 0 : i32
    %c0_i32_1 = arith.constant 0 : i32
    return %c0_i32, %c0_i32_0 : i32, i32
  }
  func.func @transform_2(%arg0: i32) -> (i32, i32) {
    %c0_i32 = arith.constant 0 : i32
    %c0_i32_0 = arith.constant 0 : i32
    %c0_i32_1 = arith.constant 0 : i32
    return %c0_i32, %c0_i32_0 : i32, i32
  }
  func.func @transform_3(%arg0: i32) -> (i32, i32) {
    %c0_i32 = arith.constant 0 : i32
    %c0_i32_0 = arith.constant 0 : i32
    %c0_i32_1 = arith.constant 0 : i32
    return %c0_i32, %c0_i32_0 : i32, i32
  }
  func.func @transform_4(%arg0: i32) -> (i32, i32) {
    %c0_i32 = arith.constant 0 : i32
    %c0_i32_0 = arith.constant 0 : i32
    %c0_i32_1 = arith.constant 0 : i32
    return %c0_i32, %c0_i32_0 : i32, i32
  }
  func.func @transform_5(%arg0: i32) -> (i32, i32, i32) {
    %c0_i32 = arith.constant 0 : i32
    %c0_i32_0 = arith.constant 0 : i32
    %c0_i32_1 = arith.constant 0 : i32
    return %arg0, %c0_i32, %c0_i32_0 : i32, i32, i32
  }
}

</mosaic_0001>

<bundles_post_ra>
// kernel: tpu_custom_call.1
= control target key start
LH: loop header
LB: loop body
LE: loop exit
PB: predicated region body
PF: predicated region fallthrough
CT: control target
= control target key end

     0   :  { %10 = vsyncpa [#allocation3], 0  ;;  %s4508_s0 = inlined_call_operand.hbm [shape: f32[2,128,256], index: 0, kind: input, shape index: {}]   ;;  %s4509_s1 = inlined_call_operand.hbm [shape: bf16[256,768], index: 1, kind: input, shape index: {}]   ;;  %s4510_s2 = inlined_call_operand.hbm [shape: f32[1,768], index: 2, kind: input, shape index: {}]   ;;  %s4511_s3 = inlined_call_operand.hbm [shape: bf16[256,256], index: 3, kind: input, shape index: {}]   ;;  %s4512_s4 = inlined_call_operand.vmem [shape: f32[1,256], index: 4, kind: input, shape index: {}]   ;;  %s4513_s5 = inlined_call_operand.hbm [shape: f32[2,128,256], index: 5, kind: output, shape index: {}]  }
   0x1   :  { %12 = vsyncpa [#allocation3 + $0x1], 0 }
   0x2   :  { %13 = vsyncpa [#allocation6], 0 }
   0x3   :  { %14 = vsyncpa [#allocation9], 0 }
   0x4   :  { %15 = vsyncpa [#allocation4], 0 }
   0x5   :  { %17 = vsyncpa [#allocation4 + $0x1], 0  ;;  %s3504_s18 = smov 0   ;;  %s3506_s19 = smov 0  }
   0x6   :  { %s3508_s20 = smov 0   ;;  %s3510_s21 = smov 0  }
   0x7 LB: > { %s3525_s22 = sadd.s32 4294967295, %s3459_s21   ;;  %s2534_s23 = sadd.s32 4294967294, %s3459_s21   ;;  %s3459_s21 = sphi %s3510_s21, %s4610_s21   ;;  %s3455_s20 = sphi %s3508_s20, %s4609_s20   ;;  %s3451_s19 = sphi %s3506_s19, %s4608_s19   ;;  %s3447_s18 = sphi %s3504_s18, %s4607_s18  }
   0x8   : > { %p43_p0 = scmp.ne.s32.totalorder %s3451_s19, %s3447_s18  ;;  %p4514_p1 = scmp.eq.s32.totalorder %s3525_s22, 0 }
   0x9   : > { %p157_p3 = scmp.eq.s32.totalorder %s2534_s23, 1  ;;  %p2535_p5 = scmp.ge.s32.totalorder %s3459_s21, 1 }
   0xa   : > { %p3534_p4 = por %p4514_p1, %p43_p0  ;;  %p164_p7 = scmp.lt.s32.totalorder %s3459_s21, 3 }
   0xb   : > { %p3539_p6 = por %p157_p3, %p43_p0  ;;  %s3461_s27 = smov [#allocation5]  }
   0xc   : > { %s4539_s24 = scalar_select %p3534_p4, 1, 0 }
   0xd   : > { %s4540_s25 = scalar_select %p3539_p6, 1, 0 }
   0xe   : > { %p3544_p8 = pnand %p2535_p5, %p164_p7  ;;  %s176_s28 = sshll.u32 %s3461_s27, 4  ;;  %s177_s28 = int_to_ptr.vmem [resolvable:$true] %s176_s28 }
   0xf   : > { %s3462_s30 = smov [#allocation7]   ;;  %s3463_s7 = smov [#allocation8]  }
  0x10   : > { %s4541_s26 = scalar_select %p3544_p8, 1, 0 }
  0x11   : > { %p2892_p9 = pneg %p3544_p8  ;;  %s190_s6 = sshll.u32 %s3462_s30, 4  ;;  %s191_s6 = int_to_ptr.vmem [resolvable:$true] %s190_s6 }
  0x12   : > { %s200_s8 = sshll.u32 %s3463_s7, 4  ;;  %s3292_s9 = scalar_lea.vmem %s177_s28, 12288  ;;  %s201_s8 = int_to_ptr.vmem [resolvable:$true] %s200_s8 }
  0x13   : > { %p3553_p11 = pnand %p2892_p9, %p4514_p1  ;;  %p3293_p13 = scmp.ne.s32.totalorder %s177_s28, %s3292_s9 }
  0x14   : > { %p3300_p5 = scmp.lt.s32.totalorder %s177_s28, %s177_s28  ;;  %p3301_p7 = scmp.lt.s32.totalorder %s3292_s9, %s3292_s9 }
  0x15   : > { %p3283_p12 = pneg %p3553_p11 }
  0x16   : > { %p3302_p9 = por %p3301_p7, %p3300_p5 }
  0x17   : > { %p3295_p0 = pnand %p3293_p13, %p3283_p12 }
  0x19   : > { %p3296_p3 = pneg %p3295_p0 }
  0x1b   : > { %p3303_p10 = pnand %p3302_p9, %p3296_p3 }
  0x1d   : > { %3306 = shalt.err (!%p3303_p10)
}
  0x1e   : > { %s3464_s10 = smov 384   ;;  %s3465_s11 = smov 24  }
  0x1f   : > { %2895 = dma.hbm_to_vmem [thread:$0]  (!%p3553_p11), %s4509_s1, 12288, %s177_s28, [#allocation6], %s3464_s10, %s3464_s10, %s3465_s11  }
  0x20   : > { %s3318_s14 = scalar_lea.vmem %s191_s6, 96  ;;  %p3326_p2 = scmp.lt.s32.totalorder %s191_s6, %s191_s6 }
  0x21   : > { %p3319_p1 = scmp.ne.s32.totalorder %s191_s6, %s3318_s14  ;;  %p3327_p6 = scmp.lt.s32.totalorder %s3318_s14, %s3318_s14 }
  0x23   : > { %p3321_p13 = pnand %p3319_p1, %p3283_p12  ;;  %p3328_p5 = por %p3327_p6, %p3326_p2 }
  0x25   : > { %p3322_p0 = pneg %p3321_p13 }
  0x27   : > { %p3329_p3 = pnand %p3328_p5, %p3322_p0 }
  0x29   : > { %3332 = shalt.err (!%p3329_p3)
}
  0x2a   : > { %2898 = dma.hbm_to_vmem [thread:$0]  (!%p3553_p11), %s4510_s2, 96, %s191_s6, [#allocation6]  }
  0x2b   : > { %s3344_s17 = scalar_lea.vmem %s201_s8, 4096  ;;  %p3352_p9 = scmp.lt.s32.totalorder %s201_s8, %s201_s8 }
  0x2c   : > { %p3345_p10 = scmp.ne.s32.totalorder %s201_s8, %s3344_s17  ;;  %p3353_p13 = scmp.lt.s32.totalorder %s3344_s17, %s3344_s17 }
  0x2e   : > { %p3347_p7 = pnand %p3345_p10, %p3283_p12  ;;  %p3354_p4 = por %p3353_p13, %p3352_p9 }
  0x30   : > { %p3348_p1 = pneg %p3347_p7 }
  0x32   : > { %p3355_p2 = pnand %p3354_p4, %p3348_p1 }
  0x34   : > { %3358 = shalt.err (!%p3355_p2)
}
  0x35   : > { %s3466_s23 = smov 128   ;;  %s3467_s27 = smov 8  }
  0x36   : > { %2901 = dma.hbm_to_vmem [thread:$0]  (!%p3553_p11), %s4511_s3, 4096, %s201_s8, [#allocation9], %s3466_s23, %s3466_s23, %s3467_s27  }
  0x37   : > { %s3584_s6 = sadd.s32 1, %s3459_s21   ;;  %s30_s9 = sadd.s32 1, %s3455_s20 }
  0x38   : > { %s27_s7 = ssub.s32 %s3459_s21, %s3584_s6  ;;  %p37_p6 = scmp.ne.s32.totalorder %s3455_s20, %s3451_s19 }
  0x39   : > { %p28_p4 = scmp.eq.s32.totalorder %s27_s7, 0  ;;  %p38_p12 = scmp.eq.s32.totalorder %s3459_s21, 0 }
  0x3a   : > { %p2913_p0 = scmp.lt.s32.totalorder %s3459_s21, 2  ;;  %p4543_p3 = scmp.eq.s32.totalorder %s3525_s22, 1 }
  0x3b   : > { %s3594_s10 = scalar_select %p28_p4, %s3455_s20, %s30_s9  }
  0x3c   : > { %p39_p5 = por %p38_p12, %p37_p6  ;;  %p3598_p10 = por %p4543_p3, %p37_p6 }
  0x3d   : > { %s217_s29 = sand.u32 1, %s3455_s20   ;;  %s2682_s12 = sshll.u32 %s3459_s21, 12 }
  0x3e   : > { %s4544_s11 = scalar_select %p3598_p10, 1, 0 }
  0x3f   : > { %s2540_s8 = sshll.u32 %s217_s29, 8  ;;  %s3607_s15 = scalar_lea.hbm %s4508_s0, %s2682_s12 }
  0x40   : > { %s221_s16 = scalar_lea.vmem [#allocation2], %s2540_s8  ;;  %p3609_p11 = pnand %p2913_p0, %p39_p5 }
  0x41   : > { %s228_s17 = sshll.u32 %s221_s16, 4  ;;  %s3615_s27 = scalar_lea.sflag [#allocation3], %s217_s29  ;;  %s3613_s17 = int_to_ptr.vmem [resolvable:$true] %s228_s17 }
  0x42   : > { %s3359_s28 = scalar_lea.hbm %s3607_s15, 4096  ;;  %p3361_p1 = pneg %p3609_p11 }
  0x43   : > { %p3360_p7 = scmp.ne.s32.totalorder %s3607_s15, %s3359_s28  ;;  %s3364_s9 = scalar_lea.hbm %s4508_s0, 8192 }
  0x44   : > { %p3365_p2 = scmp.lt.s32.totalorder %s3607_s15, %s4508_s0  ;;  %p3366_p4 = scmp.lt.s32.totalorder %s3364_s9, %s3359_s28 }
  0x45   : > { %p3362_p9 = pnand %p3361_p1, %p3360_p7 }
  0x46   : > { %p3367_p6 = por %p3366_p4, %p3365_p2 }
  0x47   : > { %p3363_p13 = pneg %p3362_p9 }
  0x49   : > { %p3368_p12 = pnand %p3367_p6, %p3363_p13 }
  0x4b   : > { %3371 = shalt.err (!%p3368_p12)
}
  0x4c   : > { %s3372_s29 = scalar_lea.vmem %s3613_s17, 4096  ;;  %s3468_s13 = smov [#allocation2]  }
  0x4d   : > { %p3373_p0 = scmp.ne.s32.totalorder %s3613_s17, %s3372_s29  ;;  %s3377_s14 = sshll.u32 %s3468_s13, 4  ;;  %s3378_s14 = int_to_ptr.vmem [resolvable:$false] %s3377_s14 }
  0x4e   : > { %s3379_s16 = scalar_lea.vmem %s3378_s14, 8192  ;;  %p3380_p7 = scmp.lt.s32.totalorder %s3613_s17, %s3378_s14 }
  0x4f   : > { %p3375_p5 = pnand %p3373_p0, %p3361_p1  ;;  %p3381_p9 = scmp.lt.s32.totalorder %s3379_s16, %s3372_s29 }
  0x51   : > { %p3376_p3 = pneg %p3375_p5  ;;  %p3382_p10 = por %p3381_p9, %p3380_p7 }
  0x53   : > { %p3383_p8 = pnand %p3382_p10, %p3376_p3 }
  0x55   : > { %3386 = shalt.err (!%p3383_p8)
}
  0x56   : > { %s3469_s28 = smov 256   ;;  %s3470_s30 = smov 16  }
  0x57   : > { %2905 = dma.hbm_to_vmem [thread:$0]  (!%p3609_p11), %s3607_s15, 4096, %s3613_s17, %s3615_s27, %s3469_s28, %s3469_s28, %s3470_s30  }
  0x58   : > { %p4546_p1 = scmp.ne.s32.totalorder %s4541_s26, 0 }
  0x5a   : > { %240 = sbr.rel (%p4546_p1) target bundleno = 1576 (0x628), region = 40 }
  0x5f   : > { %s3639_s7 = sand.u32 1, %s3451_s19   ;;  %p4547_p8 = scmp.ne.s32.totalorder %s4539_s24, 0 }
  0x60   : > { %s2544_s9 = sshll.u32 %s3639_s7, 8  ;;  %s243_s12 = scalar_lea.sflag [#allocation3], %s3639_s7 }
  0x61   : > { %s3645_s8 = scalar_lea.vmem [#allocation2], %s2544_s9 }
  0x62   : > { %3430 = dma.done.wait (%p4547_p8), %s243_s12, 4096  }
  0x63   : > { %3432 = vsyncadd (%p4547_p8), %s243_s12, 4294963200  ;;  %p4548_p10 = scmp.eq.s32.totalorder %s3525_s22, 0 }
  0x65   : > { %3434 = dma.done.wait (%p4548_p10), [#allocation6], 12384   ;;  %p4549_p11 = pmov %p4548_p10 }
  0x66   : > { %p4550_p13 = pmov %p4548_p10 }
  0x67   : > { %3436 = vsyncadd (%p4549_p11), [#allocation6], 4294954912 }
  0x68   : > { %3438 = dma.done.wait (%p4550_p13), [#allocation9], 4096   ;;  %p4551_p2 = pmov %p4548_p10 }
  0x69   : > { %v2961_v0 = vld [vmem:[#allocation5 + $0x154] ss:$24 sps:$4 sm:$0xff]   ;;  %v2963_v1 = vld [vmem:[#allocation5 + $0x150] ss:$24 sps:$4 sm:$0xff]   ;;  %v2964_v2 = vld [vmem:[#allocation5 + $0x124] ss:$24 sps:$4 sm:$0xff]  }
  0x6a   : > { %3440 = vsyncadd (%p4551_p2), [#allocation9], 4294963200  ;;  %942 = vmatprep.subr.bf16.mxu1 %v2961_v0  ;;  %v2966_v3 = vld [vmem:[#allocation5 + $0x120] ss:$24 sps:$4 sm:$0xff]   ;;  %v2967_v4 = vld [vmem:[#allocation5 + $0xf4] ss:$24 sps:$4 sm:$0xff]  }
  0x6b   : > { %943 = vmatpush1.bf16.msra.mxu1 %v2963_v1  ;;  %v2969_v5 = vld [vmem:[#allocation5 + $0xf0] ss:$24 sps:$4 sm:$0xff]   ;;  %v2970_v6 = vld [vmem:[#allocation5 + $0xc4] ss:$24 sps:$4 sm:$0xff]   ;;  %v2972_v7 = vld [vmem:[#allocation5 + $0xc0] ss:$24 sps:$4 sm:$0xff]  }
  0x6c   : > { %944 = vmatprep.subr.bf16.mxu1 %v2964_v2  ;;  %v2973_v8 = vld [vmem:[#allocation5 + $0x94] ss:$24 sps:$4 sm:$0xff]   ;;  %v2975_v9 = vld [vmem:[#allocation5 + $0x90] ss:$24 sps:$4 sm:$0xff]   ;;  %v2976_v10 = vld [vmem:[#allocation5 + $0x64] ss:$24 sps:$4 sm:$0xff]  }
  0x6d   : > { %v2978_v11 = vld [vmem:[#allocation5 + $0x60] ss:$24 sps:$4 sm:$0xff]   ;;  %v2979_v12 = vld [vmem:[#allocation5 + $0x34] ss:$24 sps:$4 sm:$0xff]   ;;  %v2981_v16 = vld [vmem:[#allocation5 + $0x30] ss:$24 sps:$4 sm:$0xff]  }
  0x6e   : > { %v287_v13 = vld [vmem:[%s3645_s8 + $0x8] sm:$0xff]  ;;  %v289_v14 = vld [vmem:[%s3645_s8 + $0x18] sm:$0xff]  ;;  %v286_v38 = vld [vmem:[%s3645_s8] sm:$0xff]  ;;  %s4393_s15 = scalar_lea.vmem [#allocation10], %s2544_s9  ;;  %s2683_s17 = sshll.u32 %s3525_s22, 12 }
  0x6f   : > { %945 = vmatpush1.bf16.msra.mxu1 %v2966_v3  ;;  %v3661_v15 = vpack.c.bf16 %v289_v14, %v287_v13  ;;  %v2982_v17 = vld [vmem:[#allocation5 + $0x4] ss:$24 sps:$4 sm:$0xff]   ;;  %v2984_v18 = vld [vmem:[#allocation5] ss:$24 sps:$4 sm:$0xff]   ;;  %v2985_v19 = vld [vmem:[#allocation5 + $0x2d4] ss:$24 sps:$4 sm:$0xff]   ;;  %s4460_s13 = scalar_lea.hbm %s4513_s5, %s2683_s17 }
  0x70   : > { %946 = vmatprep.subr.bf16.mxu1 %v2967_v4  ;;  %v2987_v20 = vld [vmem:[#allocation5 + $0x2d0] ss:$24 sps:$4 sm:$0xff]   ;;  %v2988_v21 = vld [vmem:[#allocation5 + $0x2a4] ss:$24 sps:$4 sm:$0xff]   ;;  %v2990_v22 = vld [vmem:[#allocation5 + $0x2a0] ss:$24 sps:$4 sm:$0xff]  }
  0x71   : > { %974 = vmatprep.mubr.bf16.mxu1 %v3661_v15  ;;  %1200 = vmatprep.mubr.bf16.mxu0 %v3661_v15  ;;  %v2991_v23 = vld [vmem:[#allocation5 + $0x274] ss:$24 sps:$4 sm:$0xff]   ;;  %v2993_v24 = vld [vmem:[#allocation5 + $0x270] ss:$24 sps:$4 sm:$0xff]   ;;  %v2994_v25 = vld [vmem:[#allocation5 + $0x244] ss:$24 sps:$4 sm:$0xff]  }
  0x72   : > { %v2996_v26 = vld [vmem:[#allocation5 + $0x240] ss:$24 sps:$4 sm:$0xff]   ;;  %v2997_v27 = vld [vmem:[#allocation5 + $0x214] ss:$24 sps:$4 sm:$0xff]   ;;  %v2999_v28 = vld [vmem:[#allocation5 + $0x210] ss:$24 sps:$4 sm:$0xff]  }
  0x73   : > { %947 = vmatpush1.bf16.msra.mxu1 %v2969_v5  ;;  %v3000_v29 = vld [vmem:[#allocation5 + $0x1e4] ss:$24 sps:$4 sm:$0xff]   ;;  %v3002_v30 = vld [vmem:[#allocation5 + $0x1e0] ss:$24 sps:$4 sm:$0xff]   ;;  %v3003_v31 = vld [vmem:[#allocation5 + $0x1b4] ss:$24 sps:$4 sm:$0xff]  }
  0x74   : > { %948 = vmatprep.subr.bf16.mxu1 %v2970_v6  ;;  %v3057_v32 = vld [vmem:[#allocation5 + $0x164] ss:$24 sps:$4 sm:$0xff]   ;;  %v3059_v33 = vld [vmem:[#allocation5 + $0x160] ss:$24 sps:$4 sm:$0xff]   ;;  %v3005_v34 = vld [vmem:[#allocation5 + $0x1b0] ss:$24 sps:$4 sm:$0xff]  }
  0x75   : > { %v3060_v35 = vld [vmem:[#allocation5 + $0x134] ss:$24 sps:$4 sm:$0xff]   ;;  %v3006_v36 = vld [vmem:[#allocation5 + $0x184] ss:$24 sps:$4 sm:$0xff]   ;;  %1168 = vmatprep.subr.bf16.mxu0 %v3057_v32  ;;  %v3008_v37 = vld [vmem:[#allocation5 + $0x180] ss:$24 sps:$4 sm:$0xff]  }
  0x76   : > { %1169 = vmatpush1.bf16.msra.mxu0 %v3059_v33  ;;  %v3062_v39 = vld [vmem:[#allocation5 + $0x130] ss:$24 sps:$4 sm:$0xff]   ;;  %v3063_v41 = vld [vmem:[#allocation5 + $0x104] ss:$24 sps:$4 sm:$0xff]   ;;  %v3065_v45 = vld [vmem:[#allocation5 + $0x100] ss:$24 sps:$4 sm:$0xff]  }
  0x77   : > { %949 = vmatpush1.bf16.msra.mxu1 %v2972_v7  ;;  %v288_v40 = vld [vmem:[%s3645_s8 + $0x10] sm:$0xff]  ;;  %1170 = vmatprep.subr.bf16.mxu0 %v3060_v35  ;;  %v291_v43 = vld [vmem:[%s3645_s8 + $0x28] sm:$0xff]  ;;  %v293_v44 = vld [vmem:[%s3645_s8 + $0x38] sm:$0xff]  ;;  %s2432_s23 = sshll.u32 %s4393_s15, 4  ;;  %s2419_s22 = scalar_lea.sflag [#allocation4], %s3639_s7  ;;  %s4462_s23 = int_to_ptr.vmem [resolvable:$true] %s2432_s23 }
  0x78   : > { %950 = vmatprep.subr.bf16.mxu1 %v2973_v8  ;;  %v3011_v42 = vld [vmem:[#allocation5 + $0x15c] ss:$24 sps:$4 sm:$0xff]   ;;  %v3669_v46 = vpack.c.bf16 %v288_v40, %v286_v38  ;;  %v3009_v48 = vld [vmem:[#allocation5 + $0x158] ss:$24 sps:$4 sm:$0xff]   ;;  %v3671_v49 = vpack.c.bf16 %v293_v44, %v291_v43  ;;  %v3014_v50 = vld [vmem:[#allocation5 + $0x12c] ss:$24 sps:$4 sm:$0xff]  }
  0x79   : > { %v3066_v47 = vld [vmem:[#allocation5 + $0xd4] ss:$24 sps:$4 sm:$0xff]   ;;  %v3012_v51 = vld [vmem:[#allocation5 + $0x128] ss:$24 sps:$4 sm:$0xff]   ;;  %v3069_v55 = vld [vmem:[#allocation5 + $0xa4] ss:$24 sps:$4 sm:$0xff]  }
  0x7a   : > { %1171 = vmatpush1.bf16.msra.mxu0 %v3062_v39  ;;  %v290_v52 = vld [vmem:[%s3645_s8 + $0x20] sm:$0xff]  ;;  %v3068_v53 = vld [vmem:[#allocation5 + $0xd0] ss:$24 sps:$4 sm:$0xff]   ;;  %v3017_v56 = vld [vmem:[#allocation5 + $0xfc] ss:$24 sps:$4 sm:$0xff]   ;;  %s3387_s14 = scalar_lea.vmem %s4462_s23, 4096 }
  0x7b   : > { %951 = vmatpush1.bf16.msra.mxu1 %v2975_v9  ;;  %1172 = vmatprep.subr.bf16.mxu0 %v3063_v41  ;;  %v292_v54 = vld [vmem:[%s3645_s8 + $0x30] sm:$0xff]  ;;  %v295_v57 = vld [vmem:[%s3645_s8 + $0x48] sm:$0xff]  ;;  %v297_v58 = vld [vmem:[%s3645_s8 + $0x58] sm:$0xff]  ;;  %p3388_p4 = scmp.ne.s32.totalorder %s4462_s23, %s3387_s14  ;;  %p4604_p6 = scmp.ne.s32.totalorder %s4544_s11, 0 }
  0x7c   : > { %952 = vmatprep.subr.bf16.mxu1 %v2976_v10  ;;  %v3071_v59 = vld [vmem:[#allocation5 + $0xa0] ss:$24 sps:$4 sm:$0xff]   ;;  %v3679_v60 = vpack.c.bf16 %v292_v54, %v290_v52  ;;  %v3072_v61 = vld [vmem:[#allocation5 + $0x74] ss:$24 sps:$4 sm:$0xff]   ;;  %v3681_v63 = vpack.c.bf16 %v297_v58, %v295_v57  ;;  %v3074_v4 = vld [vmem:[#allocation5 + $0x70] ss:$24 sps:$4 sm:$0xff]  }
  0x7d   : > { %v3015_v62 = vld [vmem:[#allocation5 + $0xf8] ss:$24 sps:$4 sm:$0xff]   ;;  %v3020_v0 = vld [vmem:[#allocation5 + $0xcc] ss:$24 sps:$4 sm:$0xff]   ;;  %v3018_v1 = vld [vmem:[#allocation5 + $0xc8] ss:$24 sps:$4 sm:$0xff]   ;;  %p3389_p12 = pnand %p3388_p4, %p4604_p6 }
  0x7e   : > { %1173 = vmatpush1.bf16.msra.mxu0 %v3065_v45  ;;  %v294_v2 = vld [vmem:[%s3645_s8 + $0x40] sm:$0xff]  ;;  %v296_v3 = vld [vmem:[%s3645_s8 + $0x50] sm:$0xff]  ;;  %v299_v6 = vld [vmem:[%s3645_s8 + $0x68] sm:$0xff]  ;;  %s3471_s16 = smov [#allocation10]  }
  0x7f   : > { %953 = vmatpush1.bf16.msra.mxu1 %v2978_v11  ;;  %1174 = vmatprep.subr.bf16.mxu0 %v3066_v47  ;;  %v3023_v5 = vld [vmem:[#allocation5 + $0x9c] ss:$24 sps:$4 sm:$0xff]   ;;  %v3077_v9 = vld [vmem:[#allocation5 + $0x40] ss:$24 sps:$4 sm:$0xff]   ;;  %v3026_v13 = vld [vmem:[#allocation5 + $0x6c] ss:$24 sps:$4 sm:$0xff]   ;;  %p3390_p0 = pneg %p3389_p12 }
  0x80   : > { %954 = vmatprep.subr.bf16.mxu1 %v2979_v12  ;;  %v301_v7 = vld [vmem:[%s3645_s8 + $0x78] sm:$0xff]  ;;  %v3078_v10 = vld [vmem:[#allocation5 + $0x14] ss:$24 sps:$4 sm:$0xff]   ;;  %v3689_v12 = vpack.c.bf16 %v296_v3, %v294_v2  ;;  %v3030_v32 = vld [vmem:[#allocation5 + $0x8] ss:$24 sps:$4 sm:$0xff]   ;;  %s3391_s28 = sshll.u32 %s3471_s16, 4  ;;  %s3392_s28 = int_to_ptr.vmem [resolvable:$false] %s3391_s28 }
  0x81   : > { %v3075_v8 = vld [vmem:[#allocation5 + $0x44] ss:$24 sps:$4 sm:$0xff]   ;;  %v3021_v11 = vld [vmem:[#allocation5 + $0x98] ss:$24 sps:$4 sm:$0xff]   ;;  %v3691_v14 = vpack.c.bf16 %v301_v7, %v299_v6  ;;  %v3090_v40 = vld [vmem:[#allocation5 + $0x254] ss:$24 sps:$4 sm:$0xff]   ;;  %p3394_p5 = scmp.lt.s32.totalorder %s4462_s23, %s3392_s28 }
  0x82   : > { %1175 = vmatpush1.bf16.msra.mxu0 %v3068_v53  ;;  %v302_v33 = vld [vmem:[%s3645_s8 + $0x80] sm:$0xff]  ;;  %v3035_v35 = vld [vmem:[#allocation5 + $0x2dc] ss:$24 sps:$4 sm:$0xff]   ;;  %v3033_v41 = vld [vmem:[#allocation5 + $0x2d8] ss:$24 sps:$4 sm:$0xff]   ;;  %s3393_s30 = scalar_lea.vmem %s3392_s28, 8192 }
  0x83   : > { %955 = vmatpush1.bf16.msra.mxu1 %v2981_v16  ;;  %1176 = vmatprep.subr.bf16.mxu0 %v3069_v55  ;;  %v3080_v16 = vld [vmem:[#allocation5 + $0x10] ss:$24 sps:$4 sm:$0xff]   ;;  %v3089_v38 = vld [vmem:[#allocation5 + $0x280] ss:$24 sps:$4 sm:$0xff]   ;;  %v3038_v43 = vld [vmem:[#allocation5 + $0x2ac] ss:$24 sps:$4 sm:$0xff]   ;;  %p3395_p3 = scmp.lt.s32.totalorder %s3393_s30, %s3387_s14 }
  0x84   : > { %956 = vmatprep.subr.bf16.mxu1 %v2982_v17  ;;  %v3081_v17 = vld [vmem:[#allocation5 + $0x2e4] ss:$24 sps:$4 sm:$0xff]   ;;  %v3092_v44 = vld [vmem:[#allocation5 + $0x250] ss:$24 sps:$4 sm:$0xff]   ;;  %v3095_v54 = vld [vmem:[#allocation5 + $0x220] ss:$24 sps:$4 sm:$0xff]  }
  0x85   : > { %v3093_v45 = vld [vmem:[#allocation5 + $0x224] ss:$24 sps:$4 sm:$0xff]   ;;  %v3036_v47 = vld [vmem:[#allocation5 + $0x2a8] ss:$24 sps:$4 sm:$0xff]   ;;  %v3039_v57 = vld [vmem:[#allocation5 + $0x278] ss:$24 sps:$4 sm:$0xff]   ;;  %p3396_p7 = por %p3395_p3, %p3394_p5 }
  0x86   : > { %1177 = vmatpush1.bf16.msra.mxu0 %v3071_v59  ;;  %v311_v52 = vld [vmem:[%s3645_s8 + $0xc8] sm:$0xff]  ;;  %v313_v53 = vld [vmem:[%s3645_s8 + $0xd8] sm:$0xff]  ;;  %v312_v2 = vld [vmem:[%s3645_s8 + $0xd0] sm:$0xff] }
  0x87   : > { %957 = vmatpush1.bf16.msra.mxu1 %v2984_v18  ;;  %1178 = vmatprep.subr.bf16.mxu0 %v3072_v61  ;;  %v3024_v18 = vld [vmem:[#allocation5 + $0x68] ss:$24 sps:$4 sm:$0xff]   ;;  %v3721_v58 = vpack.c.bf16 %v313_v53, %v311_v52  ;;  %v3044_v59 = vld [vmem:[#allocation5 + $0x24c] ss:$24 sps:$4 sm:$0xff]   ;;  %v3047_v3 = vld [vmem:[#allocation5 + $0x21c] ss:$24 sps:$4 sm:$0xff]   ;;  %p3397_p9 = pnand %p3396_p7, %p3390_p0 }
  0x88   : > { %958 = vmatprep.subr.bf16.mxu1 %v2985_v19  ;;  %v298_v19 = vld [vmem:[%s3645_s8 + $0x60] sm:$0xff]  ;;  %v3098_v61 = vld [vmem:[#allocation5 + $0x1f0] ss:$24 sps:$4 sm:$0xff]  }
  0x89   : > { %v3101_v6 = vld [vmem:[#allocation5 + $0x1c0] ss:$24 sps:$4 sm:$0xff]  }
  0x8a   : > { %1179 = vmatpush1.bf16.msra.mxu0 %v3074_v4  ;;  %v315_v4 = vld [vmem:[%s3645_s8 + $0xe8] sm:$0xff] }
  0x8b   : > { %959 = vmatpush2.bf16.msra.mxu1 %v2987_v20  ;;  %1180 = vmatprep.subr.bf16.mxu0 %v3075_v8  ;;  %v300_v20 = vld [vmem:[%s3645_s8 + $0x70] sm:$0xff] }
  0x8c   : > { %960 = vmatprep.subr.bf16.mxu1 %v2988_v21  ;;  %v3029_v21 = vld [vmem:[#allocation5 + $0x3c] ss:$24 sps:$4 sm:$0xff]  }
  0x8d   : > { %v3102_v8 = vld [vmem:[#allocation5 + $0x194] ss:$24 sps:$4 sm:$0xff]  }
  0x8e   : > { %1181 = vmatpush1.bf16.msra.mxu0 %v3077_v9  ;;  %v3045_v9 = vld [vmem:[#allocation5 + $0x218] ss:$24 sps:$4 sm:$0xff]  }
  0x8f   : > { %961 = vmatpush2.bf16.msra.mxu1 %v2990_v22  ;;  %v303_v22 = vld [vmem:[%s3645_s8 + $0x88] sm:$0xff]  ;;  %1182 = vmatprep.subr.bf16.mxu0 %v3078_v10 }
  0x90   : > { %962 = vmatprep.subr.bf16.mxu1 %v2991_v23  ;;  %v305_v23 = vld [vmem:[%s3645_s8 + $0x98] sm:$0xff] }
  0x92   : > { %1183 = vmatpush1.bf16.msra.mxu0 %v3080_v16  ;;  %v3048_v16 = vld [vmem:[#allocation5 + $0x1e8] ss:$24 sps:$4 sm:$0xff]  }
  0x93   : > { %963 = vmatpush2.bf16.msra.mxu1 %v2993_v24  ;;  %v3083_v24 = vld [vmem:[#allocation5 + $0x2e0] ss:$24 sps:$4 sm:$0xff]   ;;  %1184 = vmatprep.subr.bf16.mxu0 %v3081_v17 }
  0x94   : > { %964 = vmatprep.subr.bf16.mxu1 %v2994_v25  ;;  %v3699_v25 = vpack.c.bf16 %v300_v20, %v298_v19  ;;  %v314_v17 = vld [vmem:[%s3645_s8 + $0xe0] sm:$0xff]  ;;  %v3053_v19 = vld [vmem:[#allocation5 + $0x1bc] ss:$24 sps:$4 sm:$0xff]  }
  0x96   : > { %1185 = vmatpush2.bf16.msra.mxu0 %v3083_v24 }
  0x97   : > { %965 = vmatpush2.bf16.msra.mxu1 %v2996_v26  ;;  %v3084_v26 = vld [vmem:[#allocation5 + $0x2b4] ss:$24 sps:$4 sm:$0xff]  }
  0x98   : > { %966 = vmatprep.subr.bf16.mxu1 %v2997_v27  ;;  %v3027_v27 = vld [vmem:[#allocation5 + $0x38] ss:$24 sps:$4 sm:$0xff]   ;;  %1186 = vmatprep.subr.bf16.mxu0 %v3084_v26 }
  0x9b   : > { %967 = vmatpush2.bf16.msra.mxu1 %v2999_v28  ;;  %v3701_v28 = vpack.c.bf16 %v305_v23, %v303_v22  ;;  %v3056_v22 = vld [vmem:[#allocation5 + $0x18c] ss:$24 sps:$4 sm:$0xff]   ;;  %v3054_v23 = vld [vmem:[#allocation5 + $0x188] ss:$24 sps:$4 sm:$0xff]  }
  0x9c   : > { %968 = vmatprep.subr.bf16.mxu1 %v3000_v29  ;;  %v3032_v29 = vld [vmem:[#allocation5 + $0xc] ss:$24 sps:$4 sm:$0xff]  }
  0x9f   : > { %969 = vmatpush2.bf16.msra.mxu1 %v3002_v30  ;;  %v3086_v30 = vld [vmem:[#allocation5 + $0x2b0] ss:$24 sps:$4 sm:$0xff]  }
  0xa0   : > { %970 = vmatprep.subr.bf16.mxu1 %v3003_v31  ;;  %v3087_v31 = vld [vmem:[#allocation5 + $0x284] ss:$24 sps:$4 sm:$0xff]   ;;  %1187 = vmatpush2.bf16.msra.mxu0 %v3086_v30 }
  0xa1   : > { %1188 = vmatprep.subr.bf16.mxu0 %v3087_v31 }
  0xa3   : > { %971 = vmatpush2.bf16.msra.mxu1 %v3005_v34  ;;  %v304_v34 = vld [vmem:[%s3645_s8 + $0x90] sm:$0xff] }
  0xa4   : > { %972 = vmatprep.subr.bf16.mxu1 %v3006_v36  ;;  %v307_v36 = vld [vmem:[%s3645_s8 + $0xa8] sm:$0xff]  ;;  %v3709_v39 = vpack.c.bf16 %v304_v34, %v302_v33  ;;  %1189 = vmatpush2.bf16.msra.mxu0 %v3089_v38 }
  0xa5   : > { %1190 = vmatprep.subr.bf16.mxu0 %v3090_v40 }
  0xa7   : > { %973 = vmatpush2.bf16.msra.mxu1 %v3008_v37  ;;  %v309_v37 = vld [vmem:[%s3645_s8 + $0xb8] sm:$0xff] }
  0xa8   : > { %1055 = vmatprep.subr.bf16.mxu1 %v3011_v42  ;;  %v3711_v42 = vpack.c.bf16 %v309_v37, %v307_v36  ;;  %1191 = vmatpush2.bf16.msra.mxu0 %v3092_v44 }
  0xa9   : > { %1192 = vmatprep.subr.bf16.mxu0 %v3093_v45 }
  0xaa   : > { %975 = vmatmul.mubr.bf16.vlgmr.msra.gmra.mxu1 %v3669_v46 }
  0xab   : > { %1056 = vmatpush1.bf16.msra.mxu1 %v3009_v48  ;;  %984 = vmatprep.mubr.bf16.mxu1 %v3671_v49  ;;  %v306_v48 = vld [vmem:[%s3645_s8 + $0xa0] sm:$0xff] }
  0xac   : > { %1057 = vmatprep.subr.bf16.mxu1 %v3014_v50  ;;  %v308_v50 = vld [vmem:[%s3645_s8 + $0xb0] sm:$0xff]  ;;  %1193 = vmatpush2.bf16.msra.mxu0 %v3095_v54 }
  0xad   : > { %v3719_v55 = vpack.c.bf16 %v308_v50, %v306_v48 }
  0xaf   : > { %1058 = vmatpush1.bf16.msra.mxu1 %v3012_v51  ;;  %v3041_v51 = vld [vmem:[#allocation5 + $0x27c] ss:$24 sps:$4 sm:$0xff]  }
  0xb0   : > { %1059 = vmatprep.subr.bf16.mxu1 %v3017_v56  ;;  %v3096_v56 = vld [vmem:[#allocation5 + $0x1f4] ss:$24 sps:$4 sm:$0xff]  }
  0xb1   : > { %1194 = vmatprep.subr.bf16.mxu0 %v3096_v56 }
  0xb2   : > { %985 = vmatmul.mubr.bf16.gmra.mxu1 %v3679_v60  ;;  %1195 = vmatpush2.bf16.msra.mxu0 %v3098_v61 }
  0xb3   : > { %1060 = vmatpush1.bf16.msra.mxu1 %v3015_v62  ;;  %994 = vmatprep.mubr.bf16.mxu1 %v3681_v63  ;;  %v3099_v62 = vld [vmem:[#allocation5 + $0x1c4] ss:$24 sps:$4 sm:$0xff]  }
  0xb4   : > { %1061 = vmatprep.subr.bf16.mxu1 %v3020_v0  ;;  %v3042_v0 = vld [vmem:[#allocation5 + $0x248] ss:$24 sps:$4 sm:$0xff]   ;;  %1196 = vmatprep.subr.bf16.mxu0 %v3099_v62 }
  0xb6   : > { %1197 = vmatpush2.bf16.msra.mxu0 %v3101_v6 }
  0xb7   : > { %1062 = vmatpush1.bf16.msra.mxu1 %v3018_v1  ;;  %v310_v1 = vld [vmem:[%s3645_s8 + $0xc0] sm:$0xff]  ;;  %1198 = vmatprep.subr.bf16.mxu0 %v3102_v8 }
  0xb8   : > { %1063 = vmatprep.subr.bf16.mxu1 %v3023_v5  ;;  %v317_v5 = vld [vmem:[%s3645_s8 + $0xf8] sm:$0xff]  ;;  %v330_v7 = vpack.c.bf16 %v312_v2, %v310_v1 }
  0xb9   : > { %v333_v10 = vpack.c.bf16 %v317_v5, %v315_v4 }
  0xba   : > { %995 = vmatmul.mubr.bf16.gmra.mxu1 %v3689_v12 }
  0xbb   : > { %1064 = vmatpush1.bf16.msra.mxu1 %v3021_v11  ;;  %1004 = vmatprep.mubr.bf16.mxu1 %v3691_v14  ;;  %v3050_v11 = vld [vmem:[#allocation5 + $0x1ec] ss:$24 sps:$4 sm:$0xff]  }
  0xbc   : > { %1065 = vmatprep.subr.bf16.mxu1 %v3026_v13  ;;  %v3104_v13 = vld [vmem:[#allocation5 + $0x190] ss:$24 sps:$4 sm:$0xff]  }
  0xbd   : > { %1199 = vmatpush2.bf16.msra.mxu0 %v3104_v13 }
  0xbf   : > { %1066 = vmatpush1.bf16.msra.mxu1 %v3024_v18  ;;  %v316_v18 = vld [vmem:[%s3645_s8 + $0xf0] sm:$0xff] }
  0xc0   : > { %1067 = vmatprep.subr.bf16.mxu1 %v3029_v21  ;;  %v332_v20 = vpack.c.bf16 %v316_v18, %v314_v17  ;;  %v3051_v21 = vld [vmem:[#allocation5 + $0x1b8] ss:$24 sps:$4 sm:$0xff]   ;;  %1201 = vmatmul.mubr.bf16.vlgmr.msra.gmra.mxu0 %v3669_v46 }
  0xc1   : > { %1210 = vmatprep.mubr.bf16.mxu0 %v3671_v49 }
  0xc2   : > { %1005 = vmatmul.mubr.bf16.gmra.mxu1 %v3699_v25 }
  0xc3   : > { %1068 = vmatpush1.bf16.msra.mxu1 %v3027_v27  ;;  %1014 = vmatprep.mubr.bf16.mxu1 %v3701_v28 }
  0xc4   : > { %1069 = vmatprep.subr.bf16.mxu1 %v3032_v29 }
  0xc7   : > { %1070 = vmatpush1.bf16.msra.mxu1 %v3030_v32 }
  0xc8   : > { %1071 = vmatprep.subr.bf16.mxu1 %v3035_v35  ;;  %1211 = vmatmul.mubr.bf16.gmra.mxu0 %v3679_v60 }
  0xc9   : > { %1220 = vmatprep.mubr.bf16.mxu0 %v3681_v63 }
  0xca   : > { %1015 = vmatmul.mubr.bf16.gmra.mxu1 %v3709_v39 }
  0xcb   : > { %1072 = vmatpush2.bf16.msra.mxu1 %v3033_v41  ;;  %1024 = vmatprep.mubr.bf16.mxu1 %v3711_v42 }
  0xcc   : > { %1073 = vmatprep.subr.bf16.mxu1 %v3038_v43 }
  0xcf   : > { %1074 = vmatpush2.bf16.msra.mxu1 %v3036_v47 }
  0xd0   : > { %1075 = vmatprep.subr.bf16.mxu1 %v3041_v51  ;;  %1221 = vmatmul.mubr.bf16.gmra.mxu0 %v3689_v12 }
  0xd1   : > { %1230 = vmatprep.mubr.bf16.mxu0 %v3691_v14 }
  0xd2   : > { %1025 = vmatmul.mubr.bf16.gmra.mxu1 %v3719_v55 }
  0xd3   : > { %1076 = vmatpush2.bf16.msra.mxu1 %v3039_v57  ;;  %1034 = vmatprep.mubr.bf16.mxu1 %v3721_v58 }
  0xd4   : > { %1077 = vmatprep.subr.bf16.mxu1 %v3044_v59 }
  0xd7   : > { %1078 = vmatpush2.bf16.msra.mxu1 %v3042_v0 }
  0xd8   : > { %1079 = vmatprep.subr.bf16.mxu1 %v3047_v3  ;;  %1231 = vmatmul.mubr.bf16.gmra.mxu0 %v3699_v25 }
  0xd9   : > { %1240 = vmatprep.mubr.bf16.mxu0 %v3701_v28 }
  0xda   : > { %1035 = vmatmul.mubr.bf16.gmra.mxu1 %v330_v7 }
  0xdb   : > { %1080 = vmatpush2.bf16.msra.mxu1 %v3045_v9  ;;  %1044 = vmatprep.mubr.bf16.mxu1 %v333_v10 }
  0xdc   : > { %1081 = vmatprep.subr.bf16.mxu1 %v3050_v11 }
  0xdf   : > { %1082 = vmatpush2.bf16.msra.mxu1 %v3048_v16 }
  0xe0   : > { %1083 = vmatprep.subr.bf16.mxu1 %v3053_v19  ;;  %1241 = vmatmul.mubr.bf16.gmra.mxu0 %v3709_v39 }
  0xe1   : > { %1250 = vmatprep.mubr.bf16.mxu0 %v3711_v42 }
  0xe2   : > { %1045 = vmatmul.mubr.bf16.gmra.mxu1 %v332_v20 }
  0xe3   : > { %1084 = vmatpush2.bf16.msra.mxu1 %v3051_v21  ;;  %1087 = vmatprep.mubr.bf16.mxu1 %v3661_v15  ;;  %v432_v15 = vlaneseq }
  0xe4   : > { %1085 = vmatprep.subr.bf16.mxu1 %v3056_v22 }
  0xe7   : > { %1086 = vmatpush2.bf16.msra.mxu1 %v3054_v23 }
  0xe8   : > { %1251 = vmatmul.mubr.bf16.gmra.mxu0 %v3719_v55 }
  0xe9   : > { %1260 = vmatprep.mubr.bf16.mxu0 %v3721_v58 }
  0xea   : > { %1088 = vmatmul.mubr.bf16.vlgmr.msra.gmra.mxu1 %v3669_v46  ;;  %v3756_v46 = vshrl.u32 %v432_v15, 7 }
  0xeb   : > { %1097 = vmatprep.mubr.bf16.mxu1 %v3671_v49 }
  0xec   : > { %4552 = vst [vmem:[#allocation15_spill] sm:$0xff] %v3756_v46  ;;  %v4519_v49 = vsub.s32 0, %v3756_v46 }
  0xf0   : > { %1261 = vmatmul.mubr.bf16.gmra.mxu0 %v330_v7 }
  0xf1   : > { %1270 = vmatprep.mubr.bf16.mxu0 %v333_v10 }
  0xf2   : > { %1098 = vmatmul.mubr.bf16.gmra.mxu1 %v3679_v60  ;;  %v3759_v60 = vld [vmem:[#allocation7] sm:$0x3f] }
  0xf3   : > { %1107 = vmatprep.mubr.bf16.mxu1 %v3681_v63  ;;  %v4518_v63 = vsub.s32 1, %v3756_v46 }
  0xf5   : > { %v3770_v24 = vrot.slane %v3759_v60, %v4518_v63 }
  0xf8   : > { %1271 = vmatmul.mubr.bf16.gmra.mxu0 %v332_v20 }
  0xfa   : > { %1108 = vmatmul.mubr.bf16.gmra.mxu1 %v3689_v12  ;;  %v3765_v12 = vrot.slane %v3759_v60, %v4519_v49 }
  0xfb   : > { %1117 = vmatprep.mubr.bf16.mxu1 %v3691_v14 }
 0x102   : > { %1118 = vmatmul.mubr.bf16.gmra.mxu1 %v3699_v25 }
 0x103   : > { %1127 = vmatprep.mubr.bf16.mxu1 %v3701_v28 }
 0x10a   : > { %1128 = vmatmul.mubr.bf16.gmra.mxu1 %v3709_v39 }
 0x10b   : > { %1137 = vmatprep.mubr.bf16.mxu1 %v3711_v42 }
 0x112   : > { %1138 = vmatmul.mubr.bf16.gmra.mxu1 %v3719_v55 }
 0x113   : > { %1147 = vmatprep.mubr.bf16.mxu1 %v3721_v58 }
 0x11a   : > { %1148 = vmatmul.mubr.bf16.gmra.mxu1 %v330_v7 }
 0x11b   : > { %1157 = vmatprep.mubr.bf16.mxu1 %v333_v10 }
 0x122   : > { %1158 = vmatmul.mubr.bf16.gmra.mxu1 %v332_v20 }
 0x16a   : > { %v976_v14 = vpop.f32.mrf.mxu1 }
 0x16b   : > { %v977_v26 = vadd.f32 %v976_v14, %v3765_v12 }
 0x16c   : > { %v978_v25 = vpop.f32.mrf.mxu1 }
 0x16d   : > { %v979_v28 = vadd.f32 %v978_v25, %v3770_v24  ;;  %v1281_v31 = vmul.f32 0.088388346, %v977_v26 }
 0x16e   : > { %v980_v27 = vpop.f32.mrf.mxu1 }
 0x16f   : > { %v981_v29 = vadd.f32 %v980_v27, %v3765_v12  ;;  %v1282_v35 = vmul.f32 0.088388346, %v979_v28 }
 0x170   : > { %v982_v30 = vpop.f32.mrf.mxu1 }
 0x171   : > { %v1283_v32 = vmul.f32 0.088388346, %v981_v29  ;;  %v983_v33 = vadd.f32 %v982_v30, %v3770_v24 }
 0x172   : > { %v986_v34 = vpop.f32.mrf.mxu1 }
 0x173   : > { %v1313_v36 = vpack.c.bf16 %v1283_v32, %v1281_v31  ;;  %v1284_v37 = vmul.f32 0.088388346, %v983_v33  ;;  %v987_v38 = vadd.f32 %v986_v34, %v3765_v12 }
 0x174   : > { %v988_v39 = vpop.f32.mrf.mxu1 }
 0x175   : > { %v1314_v40 = vpack.c.bf16 %v1284_v37, %v1282_v35  ;;  %v989_v41 = vadd.f32 %v988_v39, %v3770_v24  ;;  %2764 = vmatprep.mubr.bf16.mxu1 %v1313_v36  ;;  %v3779_v45 = vmul.f32 0.088388346, %v987_v38 }
 0x176   : > { %v990_v42 = vpop.f32.mrf.mxu1 }
 0x177   : > { %v991_v43 = vadd.f32 %v990_v42, %v3765_v12  ;;  %2828 = vmatprep.mubr.bf16.mxu0 %v1314_v40  ;;  %v3784_v51 = vmul.f32 0.088388346, %v989_v41 }
 0x178   : > { %v992_v44 = vpop.f32.mrf.mxu1 }
 0x179   : > { %v3781_v47 = vmul.f32 0.088388346, %v991_v43  ;;  %v993_v48 = vadd.f32 %v992_v44, %v3770_v24 }
 0x17a   : > { %v996_v50 = vpop.f32.mrf.mxu1 }
 0x17b   : > { %v3788_v53 = vmul.f32 0.088388346, %v993_v48  ;;  %v997_v54 = vadd.f32 %v996_v50, %v3765_v12 }
 0x17c   : > { %v998_v55 = vpop.f32.mrf.mxu1 }
 0x17d   : > { %v999_v57 = vadd.f32 %v998_v55, %v3770_v24  ;;  %v3795_v62 = vmul.f32 0.088388346, %v997_v54 }
 0x17e   : > { %v1000_v58 = vpop.f32.mrf.mxu1 }
 0x17f   : > { %v1001_v59 = vadd.f32 %v1000_v58, %v3765_v12  ;;  %v3800_v3 = vmul.f32 0.088388346, %v999_v57 }
 0x180   : > { %v1002_v61 = vpop.f32.mrf.mxu1 }
 0x181   : > { %v3797_v0 = vmul.f32 0.088388346, %v1001_v59  ;;  %v1003_v1 = vadd.f32 %v1002_v61, %v3770_v24 }
 0x182   : > { %v1006_v2 = vpop.f32.mrf.mxu1 }
 0x183   : > { %v3804_v5 = vmul.f32 0.088388346, %v1003_v1  ;;  %v1007_v6 = vadd.f32 %v1006_v2, %v3765_v12 }
 0x184   : > { %v1008_v7 = vpop.f32.mrf.mxu1 }
 0x185   : > { %v1009_v9 = vadd.f32 %v1008_v7, %v3770_v24  ;;  %v3811_v16 = vmul.f32 0.088388346, %v1007_v6 }
 0x186   : > { %v1010_v10 = vpop.f32.mrf.mxu1 }
 0x187   : > { %v1011_v11 = vadd.f32 %v1010_v10, %v3765_v12  ;;  %v3816_v20 = vmul.f32 0.088388346, %v1009_v9 }
 0x188   : > { %v1012_v13 = vpop.f32.mrf.mxu1 }
 0x189   : > { %v3813_v17 = vmul.f32 0.088388346, %v1011_v11  ;;  %v1013_v18 = vadd.f32 %v1012_v13, %v3770_v24 }
 0x18a   : > { %v1016_v19 = vpop.f32.mrf.mxu1 }
 0x18b   : > { %v3820_v22 = vmul.f32 0.088388346, %v1013_v18  ;;  %v1017_v23 = vadd.f32 %v1016_v19, %v3765_v12 }
 0x18c   : > { %v1018_v15 = vpop.f32.mrf.mxu1 }
 0x18d   : > { %v1019_v25 = vadd.f32 %v1018_v15, %v3770_v24  ;;  %v3827_v29 = vmul.f32 0.088388346, %v1017_v23 }
 0x18e   : > { %v1020_v26 = vpop.f32.mrf.mxu1 }
 0x18f   : > { %v1021_v27 = vadd.f32 %v1020_v26, %v3765_v12  ;;  %v3832_v33 = vmul.f32 0.088388346, %v1019_v25 }
 0x190   : > { %v1022_v28 = vpop.f32.mrf.mxu1 }
 0x191   : > { %v3829_v30 = vmul.f32 0.088388346, %v1021_v27  ;;  %v1023_v31 = vadd.f32 %v1022_v28, %v3770_v24 }
 0x192   : > { %v1026_v32 = vpop.f32.mrf.mxu1 }
 0x193   : > { %v3836_v35 = vmul.f32 0.088388346, %v1023_v31  ;;  %v1027_v36 = vadd.f32 %v1026_v32, %v3765_v12  ;;  %v442_v32 = vsub.s32 2, %v3756_v46 }
 0x194   : > { %v1028_v37 = vpop.f32.mrf.mxu1 }
 0x195   : > { %v1029_v39 = vadd.f32 %v1028_v37, %v3770_v24  ;;  %v3843_v43 = vmul.f32 0.088388346, %v1027_v36 }
 0x196   : > { %v1030_v40 = vpop.f32.mrf.mxu1 }
 0x197   : > { %v1031_v41 = vadd.f32 %v1030_v40, %v3765_v12  ;;  %v3848_v54 = vmul.f32 0.088388346, %v1029_v39 }
 0x198   : > { %v1032_v42 = vpop.f32.mrf.mxu1 }
 0x199   : > { %v3845_v44 = vmul.f32 0.088388346, %v1031_v41  ;;  %v1033_v48 = vadd.f32 %v1032_v42, %v3770_v24  ;;  %4553 = vst [vmem:[#allocation16_spill] sm:$0xff] %v3848_v54  ;;  %v446_v41 = vsub.s32 3, %v3756_v46 }
 0x19a   : > { %v1036_v50 = vpop.f32.mrf.mxu1 }
 0x19b   : > { %v3852_v57 = vmul.f32 0.088388346, %v1033_v48  ;;  %v1037_v58 = vadd.f32 %v1036_v50, %v3765_v12 }
 0x19c   : > { %v1038_v59 = vpop.f32.mrf.mxu1 }
 0x19d   : > { %4554 = vst [vmem:[#allocation17_spill] sm:$0xff] %v3852_v57  ;;  %v1039_v1 = vadd.f32 %v1038_v59, %v3770_v24  ;;  %v3859_v9 = vmul.f32 0.088388346, %v1037_v58 }
 0x19e   : > { %v1040_v2 = vpop.f32.mrf.mxu1 }
 0x19f   : > { %v1041_v6 = vadd.f32 %v1040_v2, %v3765_v12  ;;  %4555 = vst [vmem:[#allocation18_spill] sm:$0xff] %v3859_v9  ;;  %v3864_v18 = vmul.f32 0.088388346, %v1039_v1  ;;  %v3894_v2 = vrot.slane %v3759_v60, %v446_v41 }
 0x1a0   : > { %v1042_v7 = vpop.f32.mrf.mxu1 }
 0x1a1   : > { %v3861_v10 = vmul.f32 0.088388346, %v1041_v6  ;;  %v1043_v11 = vadd.f32 %v1042_v7, %v3770_v24  ;;  %4557 = vst [vmem:[#allocation20_spill] sm:$0xff] %v3864_v18 }
 0x1a2   : > { %v1046_v13 = vpop.f32.mrf.mxu1 }
 0x1a3   : > { %4556 = vst [vmem:[#allocation19_spill] sm:$0xff] %v3861_v10  ;;  %v3868_v23 = vmul.f32 0.088388346, %v1043_v11  ;;  %v1047_v15 = vadd.f32 %v1046_v13, %v3765_v12 }
 0x1a4   : > { %v1048_v25 = vpop.f32.mrf.mxu1 }
 0x1a5   : > { %4558 = vst [vmem:[#allocation21_spill] sm:$0xff] %v3868_v23  ;;  %v1049_v27 = vadd.f32 %v1048_v25, %v3770_v24  ;;  %v3876_v37 = vmul.f32 0.088388346, %v1047_v15 }
 0x1a6   : > { %v1050_v28 = vpop.f32.mrf.mxu1 }
 0x1a7   : > { %v1051_v31 = vadd.f32 %v1050_v28, %v3765_v12  ;;  %4559 = vst [vmem:[#allocation22_spill] sm:$0xff] %v3876_v37  ;;  %v3882_v48 = vmul.f32 0.088388346, %v1049_v27  ;;  %v3889_v12 = vrot.slane %v3759_v60, %v442_v32 }
 0x1a8   : > { %v1052_v36 = vpop.f32.mrf.mxu1 }
 0x1a9   : > { %v3878_v39 = vmul.f32 0.088388346, %v1051_v31  ;;  %v1053_v40 = vadd.f32 %v1052_v36, %v3770_v24  ;;  %4561 = vst [vmem:[#allocation24_spill] sm:$0xff] %v3882_v48 }
 0x1aa   : > { %v1089_v42 = vpop.f32.mrf.mxu1 }
 0x1ab   : > { %4560 = vst [vmem:[#allocation23_spill] sm:$0xff] %v3878_v39  ;;  %v3886_v58 = vmul.f32 0.088388346, %v1053_v40  ;;  %v1090_v6 = vadd.f32 %v1089_v42, %v3889_v12 }
 0x1ac   : > { %v1091_v59 = vpop.f32.mrf.mxu1 }
 0x1ad   : > { %4562 = vst [vmem:[#allocation25_spill] sm:$0xff] %v3886_v58  ;;  %v1092_v13 = vadd.f32 %v1091_v59, %v3894_v2 }
 0x1ae   : > { %v1093_v24 = vpop.f32.mrf.mxu1 }
 0x1af   : > { %v1094_v7 = vadd.f32 %v1093_v24, %v3889_v12 }
 0x1b0   : > { %v1095_v11 = vpop.f32.mrf.mxu1 }
 0x1b1   : > { %v3899_v15 = vpack.c.bf16 %v1094_v7, %v1090_v6  ;;  %v1096_v25 = vadd.f32 %v1095_v11, %v3894_v2 }
 0x1b2   : > { %v1099_v27 = vpop.f32.mrf.mxu1 }
 0x1b3   : > { %v3902_v28 = vpack.c.bf16 %v1096_v25, %v1092_v13  ;;  %v1100_v36 = vadd.f32 %v1099_v27, %v3889_v12 }
 0x1b4   : > { %v1101_v31 = vpop.f32.mrf.mxu1 }
 0x1b5   : > { %v1102_v42 = vadd.f32 %v1101_v31, %v3894_v2 }
 0x1b6   : > { %v1103_v32 = vpop.f32.mrf.mxu1 }
 0x1b7   : > { %v1104_v40 = vadd.f32 %v1103_v32, %v3889_v12 }
 0x1b8   : > { %v1105_v41 = vpop.f32.mrf.mxu1 }
 0x1b9   : > { %v3907_v24 = vpack.c.bf16 %v1104_v40, %v1100_v36  ;;  %v1106_v59 = vadd.f32 %v1105_v41, %v3894_v2 }
 0x1ba   : > { %v1109_v6 = vpop.f32.mrf.mxu1 }
 0x1bb   : > { %v3910_v7 = vpack.c.bf16 %v1106_v59, %v1102_v42  ;;  %v1110_v13 = vadd.f32 %v1109_v6, %v3889_v12  ;;  %v450_v42 = vsub.s32 4, %v3756_v46  ;;  %v1202_v59 = vpop.f32.mrf.mxu0  ;;  %v454_v6 = vsub.s32 5, %v3756_v46 }
 0x1bc   : > { %v1111_v11 = vpop.f32.mrf.mxu1 }
 0x1bd   : > { %v1112_v27 = vadd.f32 %v1111_v11, %v3894_v2  ;;  %v3932_v11 = vrot.slane %v3759_v60, %v454_v6 }
 0x1be   : > { %v1113_v63 = vpop.f32.mrf.mxu1 }
 0x1bf   : > { %v1114_v25 = vadd.f32 %v1113_v63, %v3889_v12  ;;  %v3929_v63 = vrot.slane %v3759_v60, %v450_v42 }
 0x1c0   : > { %v1115_v49 = vpop.f32.mrf.mxu1 }
 0x1c1   : > { %v3915_v32 = vpack.c.bf16 %v1114_v25, %v1110_v13  ;;  %v1116_v31 = vadd.f32 %v1115_v49, %v3894_v2  ;;  %v1204_v49 = vpop.f32.mrf.mxu0  ;;  %v1203_v25 = vadd.f32 %v1202_v59, %v3929_v63 }
 0x1c2   : > { %v3918_v36 = vpop.f32.mrf.mxu1 }
 0x1c3   : > { %v3920_v40 = vpack.c.bf16 %v1116_v31, %v1112_v27  ;;  %v1205_v27 = vadd.f32 %v1204_v49, %v3932_v11  ;;  %v1206_v31 = vpop.f32.mrf.mxu0 }
 0x1c4   : > { %v3922_v41 = vpop.f32.mrf.mxu1  ;;  %v1207_v26 = vadd.f32 %v1206_v31, %v3929_v63 }
 0x1c5   : > { %v1208_v61 = vpop.f32.mrf.mxu0 }
 0x1c6   : > { %v3926_v1 = vpop.f32.mrf.mxu1  ;;  %v3943_v42 = vpack.c.bf16 %v1207_v26, %v1203_v25  ;;  %v1209_v60 = vadd.f32 %v1208_v61, %v3932_v11 }
 0x1c7   : > { %v1212_v6 = vpop.f32.mrf.mxu0 }
 0x1c8   : > { %v3934_v13 = vpop.f32.mrf.mxu1  ;;  %4563 = vst [vmem:[#allocation26_spill] sm:$0xff] %v3943_v42  ;;  %v3948_v38 = vpack.c.bf16 %v1209_v60, %v1205_v27  ;;  %v1213_v49 = vadd.f32 %v1212_v6, %v3929_v63 }
 0x1c9   : > { %v1214_v59 = vpop.f32.mrf.mxu0 }
 0x1ca   : > { %v3938_v50 = vpop.f32.mrf.mxu1  ;;  %4564 = vst [vmem:[#allocation27_spill] sm:$0xff] %v3948_v38  ;;  %v1215_v34 = vadd.f32 %v1214_v59, %v3932_v11 }
 0x1cb   : > { %v1216_v31 = vpop.f32.mrf.mxu0 }
 0x1cc   : > { %v3941_v19 = vpop.f32.mrf.mxu1  ;;  %v1217_v26 = vadd.f32 %v1216_v31, %v3929_v63 }
 0x1cd   : > { %v1218_v25 = vpop.f32.mrf.mxu0 }
 0x1ce   : > { %v3946_v55 = vpop.f32.mrf.mxu1  ;;  %v3959_v61 = vpack.c.bf16 %v1217_v26, %v1213_v49  ;;  %v1219_v27 = vadd.f32 %v1218_v25, %v3932_v11 }
 0x1cf   : > { %v1222_v60 = vpop.f32.mrf.mxu0 }
 0x1d0   : > { %v3950_v14 = vpop.f32.mrf.mxu1  ;;  %4565 = vst [vmem:[#allocation28_spill] sm:$0xff] %v3959_v61  ;;  %v3962_v4 = vpack.c.bf16 %v1219_v27, %v1215_v34  ;;  %v1223_v59 = vadd.f32 %v1222_v60, %v3929_v63 }
 0x1d1   : > { %v1224_v52 = vpop.f32.mrf.mxu0 }
 0x1d2   : > { %v3954_v21 = vpop.f32.mrf.mxu1  ;;  %4566 = vst [vmem:[#allocation29_spill] sm:$0xff] %v3962_v4  ;;  %v1225_v46 = vadd.f32 %v1224_v52, %v3932_v11 }
 0x1d3   : > { %v1226_v38 = vpop.f32.mrf.mxu0 }
 0x1d4   : > { %v3957_v8 = vpop.f32.mrf.mxu1  ;;  %v1227_v31 = vadd.f32 %v1226_v38, %v3929_v63 }
 0x1d5   : > { %v1228_v48 = vpop.f32.mrf.mxu0 }
 0x1d6   : > { %v1143_v56 = vpop.f32.mrf.mxu1  ;;  %v3967_v49 = vpack.c.bf16 %v1227_v31, %v1223_v59  ;;  %v1229_v26 = vadd.f32 %v1228_v48, %v3932_v11 }
 0x1d7   : > { %v3970_v25 = vpop.f32.mrf.mxu0 }
 0x1d8   : > { %v1145_v6 = vpop.f32.mrf.mxu1  ;;  %4567 = vst [vmem:[#allocation30_spill] sm:$0xff] %v3967_v49  ;;  %v3972_v27 = vpack.c.bf16 %v1229_v26, %v1225_v46 }
 0x1d9   : > { %v1234_v4 = vpop.f32.mrf.mxu0 }
 0x1da   : > { %v1149_v42 = vpop.f32.mrf.mxu1  ;;  %4568 = vst [vmem:[#allocation31_spill] sm:$0xff] %v3972_v27  ;;  %v1235_v60 = vadd.f32 %v1234_v4, %v3932_v11 }
 0x1db   : > { %v3975_v52 = vpop.f32.mrf.mxu0  ;;  %v1150_v4 = vadd.f32 %v1149_v42, %v3889_v12 }
 0x1dc   : > { %v1151_v58 = vpop.f32.mrf.mxu1 }
 0x1dd   : > { %v1238_v61 = vpop.f32.mrf.mxu0 }
 0x1de   : > { %v1153_v34 = vpop.f32.mrf.mxu1  ;;  %v1239_v18 = vadd.f32 %v1238_v61, %v3932_v11 }
 0x1df   : > { %v3978_v59 = vpop.f32.mrf.mxu0  ;;  %v1154_v23 = vadd.f32 %v1153_v34, %v3889_v12  ;;  %v1152_v34 = vadd.f32 %v1151_v58, %v3894_v2  ;;  %v1140_v58 = vadd.f32 %v3954_v21, %v3889_v12  ;;  %v1134_v21 = vadd.f32 %v3946_v55, %v3889_v12 }
 0x1e0   : > { %v1155_v37 = vpop.f32.mrf.mxu1  ;;  %v3980_v48 = vpack.c.bf16 %v1239_v18, %v1235_v60 }
 0x1e1   : > { %v1244_v27 = vpop.f32.mrf.mxu0  ;;  %v1156_v57 = vadd.f32 %v1155_v37, %v3894_v2 }
 0x1e2   : > { %v1159_v39 = vpop.f32.mrf.mxu1  ;;  %4569 = vst [vmem:[#allocation32_spill] sm:$0xff] %v3980_v48  ;;  %v1245_v54 = vadd.f32 %v1244_v27, %v3932_v11 }
 0x1e3   : > { %v1160_v46 = vadd.f32 %v1159_v39, %v3889_v12  ;;  %v3990_v60 = vpop.f32.mrf.mxu0  ;;  %v1341_v39 = vpack.c.bf16 %v1154_v23, %v1150_v4  ;;  %v1342_v10 = vpack.c.bf16 %v1156_v57, %v1152_v34  ;;  %v1142_v57 = vadd.f32 %v3957_v8, %v3894_v2 }
 0x1e4   : > { %v1161_v38 = vpop.f32.mrf.mxu1  ;;  %v1130_v8 = vadd.f32 %v3938_v50, %v3889_v12  ;;  %v1136_v34 = vadd.f32 %v3950_v14, %v3894_v2  ;;  %v1124_v50 = vadd.f32 %v3926_v1, %v3889_v12  ;;  %v1120_v14 = vadd.f32 %v3918_v36, %v3889_v12 }
 0x1e5   : > { %v1162_v61 = vadd.f32 %v1161_v38, %v3894_v2 }
 0x1e6   : > { %v1163_v31 = vpop.f32.mrf.mxu1 }
 0x1e7   : > { %v1164_v26 = vadd.f32 %v1163_v31, %v3889_v12  ;;  %v1248_v31 = vpop.f32.mrf.mxu0 }
 0x1e8   : > { %v1165_v49 = vpop.f32.mrf.mxu1  ;;  %v1249_v42 = vadd.f32 %v1248_v31, %v3932_v11  ;;  %v1132_v31 = vadd.f32 %v3941_v19, %v3894_v2  ;;  %v1126_v19 = vadd.f32 %v3934_v13, %v3894_v2 }
 0x1e9   : > { %v1343_v9 = vpack.c.bf16 %v1164_v26, %v1160_v46  ;;  %v1166_v18 = vadd.f32 %v1165_v49, %v3894_v2  ;;  %v3994_v37 = vpop.f32.mrf.mxu0  ;;  %v1144_v49 = vadd.f32 %v1143_v56, %v3889_v12 }
 0x1ea   : > { %v3996_v27 = vpack.c.bf16 %v1249_v42, %v1245_v54  ;;  %v1338_v55 = vpack.c.bf16 %v1136_v34, %v1132_v31  ;;  %v4596_v34 = vld [vmem:[#allocation26_spill] sm:$0xff] }
 0x1eb   : > { %v1344_v48 = vpack.c.bf16 %v1166_v18, %v1162_v61  ;;  %2748 = vmatprep.subr.bf16.mxu1 %v1343_v9  ;;  %v1254_v38 = vpop.f32.mrf.mxu0  ;;  %v1339_v26 = vpack.c.bf16 %v1144_v49, %v1140_v58  ;;  %v1335_v58 = vpack.c.bf16 %v1124_v50, %v1120_v14 }
 0x1ec   : > { %2749 = vmatpush3.bf16.xpose.msra.mxu1 %v1343_v9  ;;  %v1255_v23 = vadd.f32 %v1254_v38, %v3932_v11  ;;  %v1146_v9 = vadd.f32 %v1145_v6, %v3894_v2 }
 0x1ed   : > { %2750 = vmatprep.subr.bf16.mxu1 %v1341_v39  ;;  %2812 = vmatprep.subr.bf16.mxu0 %v1344_v48  ;;  %v1256_v46 = vpop.f32.mrf.mxu0 }
 0x1ee   : > { %2813 = vmatpush3.bf16.xpose.msra.mxu0 %v1344_v48  ;;  %v1340_v48 = vpack.c.bf16 %v1146_v9, %v1142_v57  ;;  %v1257_v57 = vadd.f32 %v1256_v46, %v3929_v63 }
 0x1ef   : > { %2814 = vmatprep.subr.bf16.mxu0 %v1342_v10  ;;  %v1258_v4 = vpop.f32.mrf.mxu0 }
 0x1f0   : > { %v1259_v54 = vadd.f32 %v1258_v4, %v3932_v11  ;;  %v4572_v4 = vpack.c.bf16 %v3788_v53, %v3784_v51  ;;  %v1237_v51 = vadd.f32 %v3975_v52, %v3929_v63  ;;  %v4585_v52 = vld [vmem:[#allocation30_spill] sm:$0xff] }
 0x1f1   : > { %v1262_v56 = vpop.f32.mrf.mxu0 }
 0x1f2   : > { %v4006_v61 = vpack.c.bf16 %v1259_v54, %v1255_v23  ;;  %v1122_v23 = vadd.f32 %v3922_v41, %v3894_v2 }
 0x1f3   : > { %v1264_v6 = vpop.f32.mrf.mxu0 }
 0x1f4   : > { %2751 = vmatpush3.bf16.xpose.msra.mxu1 %v1341_v39  ;;  %v1265_v18 = vadd.f32 %v1264_v6, %v3932_v11  ;;  %v1336_v9 = vpack.c.bf16 %v1126_v19, %v1122_v23  ;;  %v4593_v6 = vld [vmem:[#allocation25_spill] sm:$0xff] }
 0x1f5   : > { %2752 = vmatprep.subr.bf16.mxu1 %v1339_v26  ;;  %v1266_v39 = vpop.f32.mrf.mxu0 }
 0x1f6   : > { %2815 = vmatpush3.bf16.xpose.msra.mxu0 %v1342_v10  ;;  %v1337_v10 = vpack.c.bf16 %v1134_v21, %v1130_v8  ;;  %v1267_v13 = vadd.f32 %v1266_v39, %v3929_v63 }
 0x1f7   : > { %2816 = vmatprep.subr.bf16.mxu0 %v1340_v48  ;;  %v1268_v42 = vpop.f32.mrf.mxu0 }
 0x1f8   : > { %v1269_v49 = vadd.f32 %v1268_v42, %v3932_v11 }
 0x1f9   : > { %v1272_v1 = vpop.f32.mrf.mxu0 }
 0x1fa   : > { %v4018_v38 = vpack.c.bf16 %v1269_v49, %v1265_v18  ;;  %v1273_v36 = vadd.f32 %v1272_v1, %v3929_v63  ;;  %v4594_v18 = vld [vmem:[#allocation24_spill] sm:$0xff] }
 0x1fb   : > { %v1274_v12 = vpop.f32.mrf.mxu0  ;;  %v4595_v8 = vpack.c.bf16 %v4593_v6, %v4594_v18 }
 0x1fc   : > { %2753 = vmatpush3.bf16.xpose.msra.mxu1 %v1339_v26 }
 0x1fd   : > { %2754 = vmatprep.subr.bf16.mxu1 %v1337_v10  ;;  %v1276_v2 = vpop.f32.mrf.mxu0 }
 0x1fe   : > { %2817 = vmatpush3.bf16.xpose.msra.mxu0 %v1340_v48  ;;  %v1277_v41 = vadd.f32 %v1276_v2, %v3929_v63  ;;  %v4590_v48 = vld [vmem:[#allocation23_spill] sm:$0xff] }
 0x1ff   : > { %2818 = vmatprep.subr.bf16.mxu0 %v1338_v55 }
 0x204   : > { %2755 = vmatpush3.bf16.xpose.msra.mxu1 %v1337_v10 }
 0x205   : > { %2756 = vmatprep.subr.bf16.mxu1 %v1335_v58 }
 0x206   : > { %2819 = vmatpush3.bf16.xpose.msra.mxu0 %v1338_v55 }
 0x207   : > { %2820 = vmatprep.subr.bf16.mxu0 %v1336_v9 }
 0x20c   : > { %2757 = vmatpush3.bf16.xpose.msra.mxu1 %v1335_v58 }
 0x20d   : > { %2758 = vmatprep.subr.bf16.mxu1 %v3915_v32 }
 0x20e   : > { %2821 = vmatpush3.bf16.xpose.msra.mxu0 %v1336_v9 }
 0x20f   : > { %2822 = vmatprep.subr.bf16.mxu0 %v3920_v40 }
 0x214   : > { %2759 = vmatpush3.bf16.xpose.msra.mxu1 %v3915_v32  ;;  %v1359_v32 = vpack.c.bf16 %v1277_v41, %v1273_v36 }
 0x215   : > { %2760 = vmatprep.subr.bf16.mxu1 %v3907_v24 }
 0x216   : > { %2823 = vmatpush3.bf16.xpose.msra.mxu0 %v3920_v40  ;;  %v1263_v40 = vadd.f32 %v1262_v56, %v3929_v63  ;;  %v4591_v56 = vld [vmem:[#allocation22_spill] sm:$0xff] }
 0x217   : > { %2824 = vmatprep.subr.bf16.mxu0 %v3910_v7  ;;  %v4592_v21 = vpack.c.bf16 %v4590_v48, %v4591_v56 }
 0x218   : > { %v1357_v26 = vpack.c.bf16 %v1267_v13, %v1263_v40 }
 0x21c   : > { %2761 = vmatpush3.bf16.xpose.msra.mxu1 %v3907_v24  ;;  %v1253_v24 = vadd.f32 %v3994_v37, %v3929_v63  ;;  %v1247_v37 = vadd.f32 %v3990_v60, %v3929_v63  ;;  %v1278_v60 = vpop.f32.mrf.mxu0 }
 0x21d   : > { %2762 = vmatprep.subr.bf16.mxu1 %v3899_v15  ;;  %v1279_v54 = vadd.f32 %v1278_v60, %v3932_v11 }
 0x21e   : > { %2825 = vmatpush3.bf16.xpose.msra.mxu0 %v3910_v7  ;;  %v4570_v7 = vpack.c.bf16 %v3781_v47, %v3779_v45  ;;  %v1355_v46 = vpack.c.bf16 %v1257_v57, %v1253_v24  ;;  %v4573_v45 = vpack.c.bf16 %v3804_v5, %v3800_v3  ;;  %v1233_v47 = vadd.f32 %v3970_v25, %v3929_v63  ;;  %v4582_v25 = vld [vmem:[#allocation17_spill] sm:$0xff] }
 0x21f   : > { %2826 = vmatprep.subr.bf16.mxu0 %v3902_v28  ;;  %v4576_v3 = vpack.c.bf16 %v3820_v22, %v3816_v20  ;;  %v4583_v20 = vld [vmem:[#allocation16_spill] sm:$0xff] }
 0x220   : > { %v1351_v5 = vpack.c.bf16 %v1237_v51, %v1233_v47  ;;  %v4584_v22 = vpack.c.bf16 %v4582_v25, %v4583_v20 }
 0x224   : > { %2763 = vmatpush3.bf16.xpose.msra.mxu1 %v3899_v15  ;;  %v4571_v15 = vpack.c.bf16 %v3797_v0, %v3795_v62  ;;  %v4574_v62 = vpack.c.bf16 %v3813_v17, %v3811_v16  ;;  %v4575_v0 = vpack.c.bf16 %v3829_v30, %v3827_v29  ;;  %v4578_v16 = vpack.c.bf16 %v3845_v44, %v3843_v43  ;;  %v4579_v17 = vld [vmem:[#allocation19_spill] sm:$0xff]  ;;  %v4580_v29 = vld [vmem:[#allocation18_spill] sm:$0xff]  ;;  %v4589_v44 = vld [vmem:[#allocation28_spill] sm:$0xff] }
 0x225   : > { %2780 = vmatprep.subr.bf16.mxu1 %v1359_v32  ;;  %v4581_v30 = vpack.c.bf16 %v4579_v17, %v4580_v29  ;;  %v1275_v43 = vadd.f32 %v1274_v12, %v3932_v11 }
 0x226   : > { %2827 = vmatpush3.bf16.xpose.msra.mxu0 %v3902_v28  ;;  %v1243_v28 = vadd.f32 %v3978_v59, %v3929_v63  ;;  %v4577_v63 = vpack.c.bf16 %v3836_v35, %v3832_v33  ;;  %v4586_v59 = vld [vmem:[#allocation21_spill] sm:$0xff]  ;;  %v4587_v33 = vld [vmem:[#allocation20_spill] sm:$0xff] }
 0x227   : > { %v4588_v35 = vpack.c.bf16 %v4586_v59, %v4587_v33  ;;  %v4104_v39 = vpack.c.bf16 %v1279_v54, %v1275_v43 }
 0x228   : > { %v1353_v53 = vpack.c.bf16 %v1247_v37, %v1243_v28 }
 0x22b   : > { %2765 = vmatmul.mubr.bf16.vlgmr.msra.gmra.mxu1 %v4570_v7 }
 0x22c   : > { %2768 = vmatprep.mubr.bf16.mxu1 %v4571_v15  ;;  %2781 = vmatpush3.bf16.msra.mxu1 %v1359_v32 }
 0x22d   : > { %2829 = vmatmul.mubr.bf16.vlgmr.msra.gmra.mxu0 %v4572_v4  ;;  %2782 = vmatprep.subr.bf16.mxu1 %v1357_v26 }
 0x22e   : > { %2832 = vmatprep.mubr.bf16.mxu0 %v4573_v45 }
 0x230   : > { %2783 = vmatpush3.bf16.msra.mxu1 %v1357_v26 }
 0x231   : > { %2784 = vmatprep.subr.bf16.mxu1 %v1355_v46 }
 0x233   : > { %2769 = vmatmul.mubr.bf16.gmra.mxu1 %v4574_v62 }
 0x234   : > { %2772 = vmatprep.mubr.bf16.mxu1 %v4575_v0  ;;  %2785 = vmatpush3.bf16.msra.mxu1 %v1355_v46 }
 0x235   : > { %2833 = vmatmul.mubr.bf16.gmra.mxu0 %v4576_v3  ;;  %2786 = vmatprep.subr.bf16.mxu1 %v1353_v53 }
 0x236   : > { %2836 = vmatprep.mubr.bf16.mxu0 %v4577_v63 }
 0x238   : > { %2787 = vmatpush3.bf16.msra.mxu1 %v1353_v53 }
 0x239   : > { %2788 = vmatprep.subr.bf16.mxu1 %v1351_v5 }
 0x23b   : > { %2773 = vmatmul.mubr.bf16.gmra.mxu1 %v4578_v16 }
 0x23c   : > { %2776 = vmatprep.mubr.bf16.mxu1 %v4581_v30  ;;  %2789 = vmatpush3.bf16.msra.mxu1 %v1351_v5 }
 0x23d   : > { %2837 = vmatmul.mubr.bf16.gmra.mxu0 %v4584_v22  ;;  %2790 = vmatprep.subr.bf16.mxu1 %v4585_v52 }
 0x23e   : > { %2840 = vmatprep.mubr.bf16.mxu0 %v4588_v35 }
 0x240   : > { %2791 = vmatpush3.bf16.msra.mxu1 %v4585_v52 }
 0x241   : > { %2792 = vmatprep.subr.bf16.mxu1 %v4589_v44 }
 0x243   : > { %2777 = vmatmul.mubr.bf16.gmra.mxu1 %v4592_v21 }
 0x244   : > { %2793 = vmatpush3.bf16.msra.mxu1 %v4589_v44 }
 0x245   : > { %2841 = vmatmul.mubr.bf16.gmra.mxu0 %v4595_v8  ;;  %2794 = vmatprep.subr.bf16.mxu1 %v4596_v34 }
 0x248   : > { %2795 = vmatpush3.bf16.msra.mxu1 %v4596_v34 }
 0x249   : > { %2844 = vmatprep.subr.bf16.mxu1 %v4104_v39 }
 0x2eb   : > { %v4108_v31 = vpop.f32.mrf.mxu1 }
 0x2ec   : > { %1462 = vmax.xlane.f32.xlu1 %v4108_v31 }
 0x2ed   : > { %v4111_v11 = vpop.f32.mrf.mxu1  ;;  %v4113_v10 = vpop.f32.mrf.mxu0 }
 0x2ee   : > { %1458 = vmax.xlane.f32.xlu0 %v4111_v11 }
 0x2ef   : > { %v4116_v42 = vpop.f32.mrf.mxu1  ;;  %v4119_v49 = vpop.f32.mrf.mxu0 }
 0x2f0   : > { %1464 = vmax.xlane.f32.xlu1 %v4116_v42 }
 0x2f1   : > { %v4121_v55 = vpop.f32.mrf.mxu1  ;;  %v4126_v14 = vpop.f32.mrf.mxu0 }
 0x2f2   : > { %1460 = vmax.xlane.f32.xlu0 %v4121_v55 }
 0x2f3   : > { %v4124_v50 = vpop.f32.mrf.mxu1  ;;  %v4133_v58 = vpop.f32.mrf.mxu0 }
 0x2f5   : > { %v4128_v19 = vpop.f32.mrf.mxu1  ;;  %v4141_v12 = vpop.f32.mrf.mxu0 }
 0x2f6   : > { %1466 = vmax.xlane.f32.xlu0 %v4128_v19 }
 0x2f7   : > { %v4131_v23 = vpop.f32.mrf.mxu1  ;;  %v4149_v41 = vpop.f32.mrf.mxu0 }
 0x2f9   : > { %v4135_v9 = vpop.f32.mrf.mxu1  ;;  %v4157_v13 = vpop.f32.mrf.mxu0 }
 0x2fa   : > { %1470 = vmax.xlane.f32.xlu0 %v4124_v50  ;;  %1468 = vmax.xlane.f32.xlu1 %v4135_v9 }
 0x2fb   : > { %v4139_v1 = vpop.f32.mrf.mxu1  ;;  %v4165_v26 = vpop.f32.mrf.mxu0 }
 0x2fd   : > { %v4143_v2 = vpop.f32.mrf.mxu1  ;;  %v4171_v15 = vpop.f32.mrf.mxu0 }
 0x2fe   : > { %1472 = vmax.xlane.f32.xlu1 %v4131_v23  ;;  %1474 = vmax.xlane.f32.xlu0 %v4143_v2 }
 0x2ff   : > { %v4147_v36 = vpop.f32.mrf.mxu1  ;;  %v4175_v4 = vpop.f32.mrf.mxu0 }
 0x301   : > { %v4151_v32 = vpop.f32.mrf.mxu1  ;;  %v4179_v28 = vpop.f32.mrf.mxu0 }
 0x302   : > { %1478 = vmax.xlane.f32.xlu0 %v4139_v1  ;;  %1476 = vmax.xlane.f32.xlu1 %v4151_v32 }
 0x303   : > { %v4155_v40 = vpop.f32.mrf.mxu1  ;;  %v4183_v37 = vpop.f32.mrf.mxu0 }
 0x305   : > { %v4159_v24 = vpop.f32.mrf.mxu1  ;;  %v4187_v46 = vpop.f32.mrf.mxu0 }
 0x306   : > { %1480 = vmax.xlane.f32.xlu1 %v4147_v36  ;;  %1482 = vmax.xlane.f32.xlu0 %v4159_v24 }
 0x307   : > { %v4163_v57 = vpop.f32.mrf.mxu1  ;;  %v4191_v45 = vpop.f32.mrf.mxu0 }
 0x309   : > { %v4167_v7 = vpop.f32.mrf.mxu1  ;;  %v4195_v47 = vpop.f32.mrf.mxu0 }
 0x30a   : > { %1486 = vmax.xlane.f32.xlu0 %v4155_v40  ;;  %1484 = vmax.xlane.f32.xlu1 %v4167_v7 }
 0x30b   : > { %v4199_v51 = vpop.f32.mrf.mxu0 }
 0x30e   : > { %1804 = vmax.xlane.f32.xlu0 %v4119_v49  ;;  %1488 = vmax.xlane.f32.xlu1 %v4163_v57 }
 0x312   : > { %1808 = vmax.xlane.f32.xlu0 %v4113_v10  ;;  %1806 = vmax.xlane.f32.xlu1 %v4133_v58 }
 0x316   : > { %1812 = vmax.xlane.f32.xlu0 %v4149_v41  ;;  %1810 = vmax.xlane.f32.xlu1 %v4126_v14 }
 0x31a   : > { %1816 = vmax.xlane.f32.xlu0 %v4141_v12  ;;  %1814 = vmax.xlane.f32.xlu1 %v4165_v26 }
 0x31e   : > { %1820 = vmax.xlane.f32.xlu0 %v4175_v4  ;;  %1818 = vmax.xlane.f32.xlu1 %v4157_v13 }
 0x322   : > { %1824 = vmax.xlane.f32.xlu0 %v4171_v15  ;;  %1822 = vmax.xlane.f32.xlu1 %v4183_v37 }
 0x326   : > { %1828 = vmax.xlane.f32.xlu0 %v4191_v45  ;;  %1826 = vmax.xlane.f32.xlu1 %v4179_v28 }
 0x32a   : > { %1832 = vmax.xlane.f32.xlu0 %v4187_v46  ;;  %1830 = vmax.xlane.f32.xlu1 %v4199_v51 }
 0x32e   : > { %1834 = vmax.xlane.f32.xlu1 %v4195_v47 }
 0x375   : > { %v1463_v53 = vpop.xlane.xlu1 %1462 }
 0x376   : > { %v1492_v62 = vsub.f32 %v4108_v31, %v1463_v53 }
 0x377   : > { %v1459_v0 = vpop.xlane.xlu0 %1458 }
 0x378   : > { %v1490_v3 = vsub.f32 %v4111_v11, %v1459_v0  ;;  %v1510_v16 = vmul.f32 1.442695, %v1492_v62 }
 0x379   : > { %v1465_v5 = vpop.xlane.xlu1 %1464 }
 0x37a   : > { %v1506_v63 = vmul.f32 1.442695, %v1490_v3  ;;  %v1493_v17 = vsub.f32 %v4116_v42, %v1465_v5 }
 0x37b   : > { %v1461_v29 = vpop.xlane.xlu0 %1460 }
 0x37c   : > { %3153 = vpow2.f32 %v1506_v63  ;;  %v1491_v30 = vsub.f32 %v4121_v55, %v1461_v29  ;;  %v1512_v20 = vmul.f32 1.442695, %v1493_v17 }
 0x37d   : > { %3155 = vpow2.f32 %v1510_v16 }
 0x37e   : > { %v1508_v25 = vmul.f32 1.442695, %v1491_v30 }
 0x37f   : > { %v1467_v22 = vpop.xlane.xlu0 %1466 }
 0x380   : > { %3157 = vpow2.f32 %v1508_v25  ;;  %v1494_v52 = vsub.f32 %v4128_v19, %v1467_v22 }
 0x381   : > { %3159 = vpow2.f32 %v1512_v20 }
 0x382   : > { %v1514_v59 = vmul.f32 1.442695, %v1494_v52 }
 0x383   : > { %v1471_v33 = vpop.xlane.xlu0 %1470  ;;  %v1469_v35 = vpop.xlane.xlu1 %1468 }
 0x384   : > { %3161 = vpow2.f32 %v1514_v59  ;;  %v1496_v60 = vsub.f32 %v4124_v50, %v1471_v33  ;;  %v1495_v43 = vsub.f32 %v4135_v9, %v1469_v35 }
 0x386   : > { %v1518_v44 = vmul.f32 1.442695, %v1496_v60  ;;  %v1516_v54 = vmul.f32 1.442695, %v1495_v43 }
 0x387   : > { %v1473_v48 = vpop.xlane.xlu1 %1472  ;;  %v1475_v56 = vpop.xlane.xlu0 %1474 }
 0x388   : > { %3163 = vpow2.f32 %v1518_v44  ;;  %v1497_v21 = vsub.f32 %v4131_v23, %v1473_v48  ;;  %v1498_v6 = vsub.f32 %v4143_v2, %v1475_v56 }
 0x389   : > { %v4213_v18 = vpop.eup %3153  ;;  %3165 = vpow2.f32 %v1516_v54 }
 0x38a   : > { %v1520_v8 = vmul.f32 1.442695, %v1497_v21  ;;  %v1522_v34 = vmul.f32 1.442695, %v1498_v6  ;;  %1538 = vadd.xlane.f32.xlu0 %v4213_v18  ;;  %v4216_v42 = vpop.eup %3155 }
 0x38b   : > { %v1479_v31 = vpop.xlane.xlu0 %1478  ;;  %v1477_v11 = vpop.xlane.xlu1 %1476 }
 0x38c   : > { %3167 = vpow2.f32 %v1520_v8  ;;  %v1500_v55 = vsub.f32 %v4139_v1, %v1479_v31  ;;  %v1499_v50 = vsub.f32 %v4151_v32, %v1477_v11 }
 0x38d   : > { %v4220_v19 = vpop.eup %3157  ;;  %3169 = vpow2.f32 %v1522_v34 }
 0x38e   : > { %v1526_v23 = vmul.f32 1.442695, %v1500_v55  ;;  %v1524_v9 = vmul.f32 1.442695, %v1499_v50  ;;  %1542 = vadd.xlane.f32.xlu0 %v4216_v42  ;;  %1540 = vadd.xlane.f32.xlu1 %v4220_v19  ;;  %v4224_v62 = vpop.eup %3159 }
 0x38f   : > { %v1481_v2 = vpop.xlane.xlu1 %1480  ;;  %v1483_v53 = vpop.xlane.xlu0 %1482 }
 0x390   : > { %3171 = vpow2.f32 %v1526_v23  ;;  %v1501_v0 = vsub.f32 %v4147_v36, %v1481_v2  ;;  %v1502_v1 = vsub.f32 %v4159_v24, %v1483_v53 }
 0x391   : > { %v4228_v3 = vpop.eup %3161  ;;  %3173 = vpow2.f32 %v1524_v9 }
 0x392   : > { %v1528_v32 = vmul.f32 1.442695, %v1501_v0  ;;  %v1530_v5 = vmul.f32 1.442695, %v1502_v1  ;;  %1546 = vadd.xlane.f32.xlu0 %v4228_v3  ;;  %1544 = vadd.xlane.f32.xlu1 %v4224_v62 }
 0x393   : > { %v1487_v63 = vpop.xlane.xlu0 %1486  ;;  %v1485_v16 = vpop.xlane.xlu1 %1484 }
 0x394   : > { %3175 = vpow2.f32 %v1528_v32  ;;  %v1504_v17 = vsub.f32 %v4155_v40, %v1487_v63  ;;  %v1503_v29 = vsub.f32 %v4167_v7, %v1485_v16 }
 0x395   : > { %v4234_v30 = vpop.eup %3163  ;;  %3177 = vpow2.f32 %v1530_v5 }
 0x396   : > { %v4236_v36 = vpop.eup %3165  ;;  %v1534_v24 = vmul.f32 1.442695, %v1504_v17  ;;  %v1532_v25 = vmul.f32 1.442695, %v1503_v29  ;;  %1550 = vadd.xlane.f32.xlu0 %v4234_v30 }
 0x397   : > { %1548 = vadd.xlane.f32.xlu1 %v4236_v36  ;;  %v1805_v20 = vpop.xlane.xlu0 %1804  ;;  %v1489_v22 = vpop.xlane.xlu1 %1488 }
 0x398   : > { %3179 = vpow2.f32 %v1534_v24  ;;  %v1836_v52 = vsub.f32 %v4119_v49, %v1805_v20  ;;  %v1505_v40 = vsub.f32 %v4163_v57, %v1489_v22 }
 0x399   : > { %v4242_v59 = vpop.eup %3167  ;;  %3181 = vpow2.f32 %v1532_v25 }
 0x39a   : > { %v4244_v7 = vpop.eup %3169  ;;  %v1852_v33 = vmul.f32 1.442695, %v1836_v52  ;;  %v1536_v35 = vmul.f32 1.442695, %v1505_v40 }
 0x39b   : > { %1554 = vadd.xlane.f32.xlu0 %v4244_v7  ;;  %1552 = vadd.xlane.f32.xlu1 %v4242_v59  ;;  %v1809_v60 = vpop.xlane.xlu0 %1808  ;;  %v1807_v43 = vpop.xlane.xlu1 %1806 }
 0x39c   : > { %3183 = vpow2.f32 %v1852_v33  ;;  %v1838_v44 = vsub.f32 %v4113_v10, %v1809_v60  ;;  %v1837_v49 = vsub.f32 %v4133_v58, %v1807_v43 }
 0x39d   : > { %v4250_v54 = vpop.eup %3171  ;;  %3185 = vpow2.f32 %v1536_v35 }
 0x39e   : > { %v4252_v57 = vpop.eup %3173  ;;  %v1856_v48 = vmul.f32 1.442695, %v1838_v44  ;;  %v1854_v56 = vmul.f32 1.442695, %v1837_v49 }
 0x39f   : > { %1558 = vadd.xlane.f32.xlu0 %v4250_v54  ;;  %1556 = vadd.xlane.f32.xlu1 %v4252_v57  ;;  %v1813_v21 = vpop.xlane.xlu0 %1812  ;;  %v1811_v6 = vpop.xlane.xlu1 %1810 }
 0x3a0   : > { %3187 = vpow2.f32 %v1856_v48  ;;  %v1840_v8 = vsub.f32 %v4149_v41, %v1813_v21  ;;  %v1839_v10 = vsub.f32 %v4126_v14, %v1811_v6 }
 0x3a1   : > { %v4258_v34 = vpop.eup %3175  ;;  %3189 = vpow2.f32 %v1854_v56 }
 0x3a2   : > { %v4260_v58 = vpop.eup %3177  ;;  %v1860_v31 = vmul.f32 1.442695, %v1840_v8  ;;  %v1858_v11 = vmul.f32 1.442695, %v1839_v10 }
 0x3a3   : > { %1562 = vadd.xlane.f32.xlu0 %v4260_v58  ;;  %1560 = vadd.xlane.f32.xlu1 %v4258_v34  ;;  %v1817_v55 = vpop.xlane.xlu0 %1816  ;;  %v1815_v50 = vpop.xlane.xlu1 %1814 }
 0x3a4   : > { %3191 = vpow2.f32 %v1860_v31  ;;  %v1842_v23 = vsub.f32 %v4141_v12, %v1817_v55  ;;  %v1841_v41 = vsub.f32 %v4165_v26, %v1815_v50 }
 0x3a5   : > { %v4266_v9 = vpop.eup %3179  ;;  %3193 = vpow2.f32 %v1858_v11 }
 0x3a6   : > { %v4268_v14 = vpop.eup %3181  ;;  %v1864_v2 = vmul.f32 1.442695, %v1842_v23  ;;  %v1862_v53 = vmul.f32 1.442695, %v1841_v41 }
 0x3a7   : > { %1566 = vadd.xlane.f32.xlu0 %v4266_v9  ;;  %1564 = vadd.xlane.f32.xlu1 %v4268_v14  ;;  %v1821_v0 = vpop.xlane.xlu0 %1820  ;;  %v1819_v1 = vpop.xlane.xlu1 %1818 }
 0x3a8   : > { %3195 = vpow2.f32 %v1864_v2  ;;  %v1844_v32 = vsub.f32 %v4175_v4, %v1821_v0  ;;  %v1843_v12 = vsub.f32 %v4157_v13, %v1819_v1  ;;  %v3107_v0 = vld [vmem:[#allocation8 + $0x74] ss:$8 sps:$4 sm:$0xff]   ;;  %v3110_v1 = vld [vmem:[#allocation8 + $0x64] ss:$8 sps:$4 sm:$0xff]  }
 0x3a9   : > { %v4274_v5 = vpop.eup %3183  ;;  %3197 = vpow2.f32 %v1862_v53  ;;  %v3105_v53 = vld [vmem:[#allocation8 + $0x70] ss:$8 sps:$4 sm:$0xff]   ;;  %2273 = vmatprep.subr.bf16.mxu0 %v3107_v0 }
 0x3aa   : > { %v4276_v26 = vpop.eup %3185  ;;  %v1868_v63 = vmul.f32 1.442695, %v1844_v32  ;;  %v1866_v16 = vmul.f32 1.442695, %v1843_v12  ;;  %2274 = vmatpush1.bf16.msra.mxu0 %v3105_v53  ;;  %v3108_v32 = vld [vmem:[#allocation8 + $0x60] ss:$8 sps:$4 sm:$0xff]  }
 0x3ab   : > { %1884 = vadd.xlane.f32.xlu0 %v4274_v5  ;;  %1568 = vadd.xlane.f32.xlu1 %v4276_v26  ;;  %v1825_v17 = vpop.xlane.xlu0 %1824  ;;  %v1823_v29 = vpop.xlane.xlu1 %1822  ;;  %v3113_v12 = vld [vmem:[#allocation8 + $0x54] ss:$8 sps:$4 sm:$0xff]  }
 0x3ac   : > { %3199 = vpow2.f32 %v1868_v63  ;;  %v1846_v24 = vsub.f32 %v4171_v15, %v1825_v17  ;;  %v1845_v4 = vsub.f32 %v4183_v37, %v1823_v29  ;;  %2275 = vmatprep.subr.bf16.mxu0 %v3110_v1  ;;  %v3111_v63 = vld [vmem:[#allocation8 + $0x50] ss:$8 sps:$4 sm:$0xff]   ;;  %v3114_v17 = vld [vmem:[#allocation8 + $0x40] ss:$8 sps:$4 sm:$0xff]   ;;  %v3119_v29 = vld [vmem:[#allocation8 + $0x34] ss:$8 sps:$4 sm:$0xff]  }
 0x3ad   : > { %v4282_v25 = vpop.eup %3187  ;;  %3201 = vpow2.f32 %v1866_v16  ;;  %v3116_v16 = vld [vmem:[#allocation8 + $0x44] ss:$8 sps:$4 sm:$0xff]  }
 0x3ae   : > { %v4284_v13 = vpop.eup %3189  ;;  %v1872_v20 = vmul.f32 1.442695, %v1846_v24  ;;  %v1870_v22 = vmul.f32 1.442695, %v1845_v4  ;;  %2276 = vmatpush1.bf16.msra.mxu0 %v3108_v32  ;;  %v3117_v24 = vld [vmem:[#allocation8 + $0x30] ss:$8 sps:$4 sm:$0xff]  }
 0x3af   : > { %1888 = vadd.xlane.f32.xlu0 %v4282_v25  ;;  %1886 = vadd.xlane.f32.xlu1 %v4284_v13  ;;  %v1829_v52 = vpop.xlane.xlu0 %1828  ;;  %v1827_v40 = vpop.xlane.xlu1 %1826  ;;  %v3122_v4 = vld [vmem:[#allocation8 + $0x24] ss:$8 sps:$4 sm:$0xff]  }
 0x3b0   : > { %3203 = vpow2.f32 %v1872_v20  ;;  %v1848_v33 = vsub.f32 %v4191_v45, %v1829_v52  ;;  %v1847_v15 = vsub.f32 %v4179_v28, %v1827_v40  ;;  %2277 = vmatprep.subr.bf16.mxu0 %v3113_v12  ;;  %v3120_v20 = vld [vmem:[#allocation8 + $0x20] ss:$8 sps:$4 sm:$0xff]  }
 0x3b1   : > { %v4290_v35 = vpop.eup %3191  ;;  %3205 = vpow2.f32 %v1870_v22 }
 0x3b2   : > { %v4292_v37 = vpop.eup %3193  ;;  %v1876_v60 = vmul.f32 1.442695, %v1848_v33  ;;  %v1874_v43 = vmul.f32 1.442695, %v1847_v15  ;;  %2278 = vmatpush1.bf16.msra.mxu0 %v3111_v63 }
 0x3b3   : > { %1892 = vadd.xlane.f32.xlu0 %v4290_v35  ;;  %1890 = vadd.xlane.f32.xlu1 %v4292_v37  ;;  %v1833_v44 = vpop.xlane.xlu0 %1832  ;;  %v1831_v49 = vpop.xlane.xlu1 %1830 }
 0x3b4   : > { %3207 = vpow2.f32 %v1876_v60  ;;  %v1850_v48 = vsub.f32 %v4187_v46, %v1833_v44  ;;  %v1849_v45 = vsub.f32 %v4199_v51, %v1831_v49  ;;  %2279 = vmatprep.subr.bf16.mxu0 %v3116_v16 }
 0x3b5   : > { %v4298_v56 = vpop.eup %3195  ;;  %3209 = vpow2.f32 %v1874_v43 }
 0x3b6   : > { %v4300_v28 = vpop.eup %3197  ;;  %v1880_v21 = vmul.f32 1.442695, %v1850_v48  ;;  %v1878_v6 = vmul.f32 1.442695, %v1849_v45  ;;  %2280 = vmatpush1.bf16.msra.mxu0 %v3114_v17 }
 0x3b7   : > { %1896 = vadd.xlane.f32.xlu0 %v4298_v56  ;;  %1894 = vadd.xlane.f32.xlu1 %v4300_v28  ;;  %v1835_v8 = vpop.xlane.xlu1 %1834 }
 0x3b8   : > { %3211 = vpow2.f32 %v1880_v21  ;;  %v1851_v10 = vsub.f32 %v4195_v47, %v1835_v8  ;;  %2281 = vmatprep.subr.bf16.mxu0 %v3119_v29 }
 0x3b9   : > { %v4305_v31 = vpop.eup %3199  ;;  %3213 = vpow2.f32 %v1878_v6 }
 0x3ba   : > { %v4307_v46 = vpop.eup %3201  ;;  %v1882_v51 = vmul.f32 1.442695, %v1851_v10  ;;  %2282 = vmatpush1.bf16.msra.mxu0 %v3117_v24 }
 0x3bb   : > { %1900 = vadd.xlane.f32.xlu0 %v4305_v31  ;;  %1898 = vadd.xlane.f32.xlu1 %v4307_v46 }
 0x3bc   : > { %3215 = vpow2.f32 %v1882_v51  ;;  %2283 = vmatprep.subr.bf16.mxu0 %v3122_v4 }
 0x3bd   : > { %v4311_v11 = vpop.eup %3203 }
 0x3be   : > { %v4313_v55 = vpop.eup %3205  ;;  %2284 = vmatpush1.bf16.msra.mxu0 %v3120_v20 }
 0x3bf   : > { %1904 = vadd.xlane.f32.xlu0 %v4311_v11  ;;  %1902 = vadd.xlane.f32.xlu1 %v4313_v55 }
 0x3c1   : > { %v4317_v47 = vpop.eup %3207 }
 0x3c2   : > { %v4319_v50 = vpop.eup %3209 }
 0x3c3   : > { %1908 = vadd.xlane.f32.xlu0 %v4317_v47  ;;  %1906 = vadd.xlane.f32.xlu1 %v4319_v50 }
 0x3c5   : > { %v4323_v23 = vpop.eup %3211 }
 0x3c6   : > { %v4325_v41 = vpop.eup %3213 }
 0x3c7   : > { %1912 = vadd.xlane.f32.xlu0 %v4323_v23  ;;  %1910 = vadd.xlane.f32.xlu1 %v4325_v41 }
 0x3c9   : > { %v4329_v2 = vpop.eup %3215 }
 0x3cb   : > { %1914 = vadd.xlane.f32.xlu1 %v4329_v2 }
 0x413   : > { %v1539_v22 = vpop.xlane.xlu0 %1538 }
 0x414   : > { %3217 = vrcp.f32 %v1539_v22 }
 0x417   : > { %v1543_v52 = vpop.xlane.xlu0 %1542  ;;  %v1541_v40 = vpop.xlane.xlu1 %1540 }
 0x418   : > { %3219 = vrcp.f32 %v1541_v40 }
 0x419   : > { %3221 = vrcp.f32 %v1543_v52 }
 0x41b   : > { %v1547_v33 = vpop.xlane.xlu0 %1546  ;;  %v1545_v15 = vpop.xlane.xlu1 %1544 }
 0x41c   : > { %3223 = vrcp.f32 %v1545_v15 }
 0x41d   : > { %3225 = vrcp.f32 %v1547_v33 }
 0x41f   : > { %v1551_v60 = vpop.xlane.xlu0 %1550 }
 0x420   : > { %v1549_v43 = vpop.xlane.xlu1 %1548 }
 0x421   : > { %3227 = vrcp.f32 %v1549_v43  ;;  %v3218_v44 = vpop.eup %3217 }
 0x422   : > { %3229 = vrcp.f32 %v1551_v60  ;;  %v1586_v21 = vmul.f32 %v3218_v44, %v4213_v18 }
 0x424   : > { %v1555_v49 = vpop.xlane.xlu0 %1554  ;;  %v1553_v48 = vpop.xlane.xlu1 %1552 }
 0x425   : > { %v3220_v45 = vpop.eup %3219  ;;  %3231 = vrcp.f32 %v1553_v48 }
 0x426   : > { %v1587_v6 = vmul.f32 %v3220_v45, %v4220_v19  ;;  %v3222_v8 = vpop.eup %3221  ;;  %3233 = vrcp.f32 %v1555_v49 }
 0x427   : > { %v1588_v1 = vmul.f32 %v3222_v8, %v4216_v42 }
 0x428   : > { %v1559_v10 = vpop.xlane.xlu0 %1558  ;;  %v1557_v51 = vpop.xlane.xlu1 %1556  ;;  %v1602_v53 = vpack.c.bf16 %v1587_v6, %v1586_v21 }
 0x429   : > { %v3224_v0 = vpop.eup %3223  ;;  %3235 = vrcp.f32 %v1557_v51 }
 0x42a   : > { %2796 = vmatprep.mubr.bf16.mxu1 %v1602_v53  ;;  %v1589_v32 = vmul.f32 %v3224_v0, %v4224_v62  ;;  %v3226_v12 = vpop.eup %3225  ;;  %3237 = vrcp.f32 %v1559_v10 }
 0x42b   : > { %v1590_v19 = vmul.f32 %v3226_v12, %v4228_v3 }
 0x42c   : > { %v1563_v63 = vpop.xlane.xlu0 %1562  ;;  %v1561_v16 = vpop.xlane.xlu1 %1560  ;;  %v1603_v17 = vpack.c.bf16 %v1589_v32, %v1588_v1 }
 0x42d   : > { %3239 = vrcp.f32 %v1561_v16 }
 0x42e   : > { %v3228_v18 = vpop.eup %3227  ;;  %2797 = vmatmul.mubr.bf16.vlgmr.msra.gmra.mxu1 %v1603_v17  ;;  %3241 = vrcp.f32 %v1563_v63 }
 0x42f   : > { %v1591_v29 = vmul.f32 %v3228_v18, %v4236_v36  ;;  %2845 = vmatpush3.bf16.msra.mxu1 %v4104_v39  ;;  %v3230_v42 = vpop.eup %3229 }
 0x430   : > { %v1567_v24 = vpop.xlane.xlu0 %1566  ;;  %v1565_v4 = vpop.xlane.xlu1 %1564  ;;  %2846 = vmatprep.subr.bf16.mxu1 %v4018_v38  ;;  %v1592_v3 = vmul.f32 %v3230_v42, %v4234_v30 }
 0x431   : > { %v1604_v62 = vpack.c.bf16 %v1591_v29, %v1590_v19  ;;  %3243 = vrcp.f32 %v1565_v4 }
 0x432   : > { %v3232_v20 = vpop.eup %3231  ;;  %3245 = vrcp.f32 %v1567_v24 }
 0x433   : > { %2800 = vmatprep.mubr.bf16.mxu1 %v1604_v62  ;;  %2847 = vmatpush3.bf16.msra.mxu1 %v4018_v38  ;;  %v1593_v36 = vmul.f32 %v3232_v20, %v4242_v59  ;;  %v3234_v40 = vpop.eup %3233 }
 0x434   : > { %v1885_v22 = vpop.xlane.xlu0 %1884  ;;  %v1569_v52 = vpop.xlane.xlu1 %1568  ;;  %2848 = vmatprep.subr.bf16.mxu1 %v4006_v61  ;;  %v1594_v43 = vmul.f32 %v3234_v40, %v4244_v7  ;;  %v4597_v7 = vld [vmem:[#allocation32_spill] sm:$0xff] }
 0x435   : > { %3247 = vrcp.f32 %v1569_v52  ;;  %v1605_v39 = vpack.c.bf16 %v1593_v36, %v1592_v3 }
 0x436   : > { %v3236_v33 = vpop.eup %3235  ;;  %3249 = vrcp.f32 %v1885_v22 }
 0x437   : > { %2801 = vmatmul.mubr.bf16.gmra.mxu1 %v1605_v39  ;;  %v1595_v38 = vmul.f32 %v3236_v33, %v4252_v57  ;;  %v3238_v44 = vpop.eup %3237 }
 0x438   : > { %v1889_v15 = vpop.xlane.xlu0 %1888  ;;  %v1887_v60 = vpop.xlane.xlu1 %1886  ;;  %2849 = vmatpush3.bf16.msra.mxu1 %v4006_v61  ;;  %v1596_v45 = vmul.f32 %v3238_v44, %v4250_v54  ;;  %v4598_v54 = vld [vmem:[#allocation31_spill] sm:$0xff] }
 0x439   : > { %2850 = vmatprep.subr.bf16.mxu1 %v3996_v27  ;;  %3251 = vrcp.f32 %v1887_v60  ;;  %v1606_v30 = vpack.c.bf16 %v1595_v38, %v1594_v43 }
 0x43a   : > { %v3240_v59 = vpop.eup %3239  ;;  %3253 = vrcp.f32 %v1889_v15 }
 0x43b   : > { %2804 = vmatprep.mubr.bf16.mxu1 %v1606_v30  ;;  %v1597_v21 = vmul.f32 %v3240_v59, %v4258_v34  ;;  %v3242_v6 = vpop.eup %3241 }
 0x43c   : > { %v1893_v49 = vpop.xlane.xlu0 %1892  ;;  %v1891_v48 = vpop.xlane.xlu1 %1890  ;;  %2851 = vmatpush3.bf16.msra.mxu1 %v3996_v27  ;;  %v1598_v51 = vmul.f32 %v3242_v6, %v4260_v58  ;;  %v4599_v58 = vld [vmem:[#allocation29_spill] sm:$0xff] }
 0x43d   : > { %2852 = vmatprep.subr.bf16.mxu1 %v4597_v7  ;;  %3255 = vrcp.f32 %v1891_v48  ;;  %v1607_v61 = vpack.c.bf16 %v1597_v21, %v1596_v45 }
 0x43e   : > { %v3244_v57 = vpop.eup %3243  ;;  %3257 = vrcp.f32 %v1893_v49 }
 0x43f   : > { %2805 = vmatmul.mubr.bf16.gmra.mxu1 %v1607_v61  ;;  %v1599_v53 = vmul.f32 %v3244_v57, %v4268_v14  ;;  %v3246_v0 = vpop.eup %3245 }
 0x440   : > { %v1897_v8 = vpop.xlane.xlu0 %1896  ;;  %v1895_v10 = vpop.xlane.xlu1 %1894  ;;  %2853 = vmatpush3.bf16.msra.mxu1 %v4597_v7  ;;  %v1600_v12 = vmul.f32 %v3246_v0, %v4266_v9  ;;  %v4600_v9 = vld [vmem:[#allocation27_spill] sm:$0xff] }
 0x441   : > { %2854 = vmatprep.subr.bf16.mxu1 %v4598_v54  ;;  %3259 = vrcp.f32 %v1895_v10  ;;  %v1608_v27 = vpack.c.bf16 %v1599_v53, %v1598_v51  ;;  %v3128_v0 = vld [vmem:[#allocation8 + $0x4] ss:$8 sps:$4 sm:$0xff]  }
 0x442   : > { %v3248_v34 = vpop.eup %3247  ;;  %3261 = vrcp.f32 %v1897_v8 }
 0x443   : > { %2808 = vmatprep.mubr.bf16.mxu1 %v1608_v27  ;;  %v1601_v63 = vmul.f32 %v3248_v34, %v4276_v26  ;;  %v3250_v16 = vpop.eup %3249  ;;  %v3129_v27 = vld [vmem:[#allocation8 + $0xf0] ss:$8 sps:$4 sm:$0xff]   ;;  %v3132_v34 = vld [vmem:[#allocation8 + $0xe0] ss:$8 sps:$4 sm:$0xff]  }
 0x444   : > { %v1901_v1 = vpop.xlane.xlu0 %1900  ;;  %v1899_v32 = vpop.xlane.xlu1 %1898  ;;  %2855 = vmatpush3.bf16.msra.mxu1 %v4598_v54  ;;  %v1932_v29 = vmul.f32 %v3250_v16, %v4274_v5  ;;  %v3126_v54 = vld [vmem:[#allocation8] ss:$8 sps:$4 sm:$0xff]   ;;  %v3146_v16 = vld [vmem:[#allocation8 + $0xa4] ss:$8 sps:$4 sm:$0xff]  }
 0x445   : > { %2856 = vmatprep.subr.bf16.mxu1 %v4599_v58  ;;  %3263 = vrcp.f32 %v1899_v32  ;;  %v1609_v14 = vpack.c.bf16 %v1601_v63, %v1600_v12  ;;  %v3138_v32 = vld [vmem:[#allocation8 + $0xc0] ss:$8 sps:$4 sm:$0xff]   ;;  %v3143_v12 = vld [vmem:[#allocation8 + $0xb4] ss:$8 sps:$4 sm:$0xff]   ;;  %v3141_v63 = vld [vmem:[#allocation8 + $0xb0] ss:$8 sps:$4 sm:$0xff]  }
 0x446   : > { %v3252_v17 = vpop.eup %3251  ;;  %3265 = vrcp.f32 %v1901_v1  ;;  %v3140_v1 = vld [vmem:[#allocation8 + $0xc4] ss:$8 sps:$4 sm:$0xff]  }
 0x447   : > { %2809 = vmatmul.mubr.bf16.gmra.mxu1 %v1609_v14  ;;  %v1933_v24 = vmul.f32 %v3252_v17, %v4284_v13  ;;  %v3254_v4 = vpop.eup %3253  ;;  %v3149_v14 = vld [vmem:[#allocation8 + $0x94] ss:$8 sps:$4 sm:$0xff]   ;;  %v3147_v17 = vld [vmem:[#allocation8 + $0x90] ss:$8 sps:$4 sm:$0xff]  }
 0x448   : > { %v1905_v18 = vpop.xlane.xlu0 %1904  ;;  %v1903_v19 = vpop.xlane.xlu1 %1902  ;;  %2857 = vmatpush3.bf16.msra.mxu1 %v4599_v58  ;;  %v1934_v22 = vmul.f32 %v3254_v4, %v4282_v25  ;;  %v3144_v58 = vld [vmem:[#allocation8 + $0xa0] ss:$8 sps:$4 sm:$0xff]  }
 0x449   : > { %2858 = vmatprep.subr.bf16.mxu1 %v4600_v9  ;;  %3267 = vrcp.f32 %v1903_v19  ;;  %v1948_v26 = vpack.c.bf16 %v1933_v24, %v1932_v29  ;;  %v3150_v19 = vld [vmem:[#allocation8 + $0x80] ss:$8 sps:$4 sm:$0xff]  }
 0x44a   : > { %v3256_v42 = vpop.eup %3255  ;;  %3269 = vrcp.f32 %v1905_v18  ;;  %v3152_v18 = vld [vmem:[#allocation8 + $0x84] ss:$8 sps:$4 sm:$0xff]  }
 0x44b   : > { %2860 = vmatprep.mubr.bf16.mxu1 %v1948_v26  ;;  %v1935_v52 = vmul.f32 %v3256_v42, %v4292_v37  ;;  %v3258_v3 = vpop.eup %3257 }
 0x44c   : > { %v1909_v62 = vpop.xlane.xlu0 %1908  ;;  %v1907_v20 = vpop.xlane.xlu1 %1906  ;;  %2859 = vmatpush3.bf16.msra.mxu1 %v4600_v9  ;;  %v1936_v39 = vmul.f32 %v3258_v3, %v4290_v35 }
 0x44d   : > { %3271 = vrcp.f32 %v1907_v20  ;;  %v1949_v5 = vpack.c.bf16 %v1935_v52, %v1934_v22 }
 0x44e   : > { %v3260_v13 = vpop.eup %3259  ;;  %3273 = vrcp.f32 %v1909_v62 }
 0x44f   : > { %2861 = vmatmul.mubr.bf16.vlgmr.msra.gmra.mxu1 %v1949_v5  ;;  %v1937_v33 = vmul.f32 %v3260_v13, %v4300_v28  ;;  %v3262_v15 = vpop.eup %3261 }
 0x450   : > { %v1913_v36 = vpop.xlane.xlu0 %1912  ;;  %v1911_v40 = vpop.xlane.xlu1 %1910  ;;  %v1938_v43 = vmul.f32 %v3262_v15, %v4298_v56 }
 0x451   : > { %3275 = vrcp.f32 %v1911_v40  ;;  %v1950_v60 = vpack.c.bf16 %v1937_v33, %v1936_v39 }
 0x452   : > { %v3264_v25 = vpop.eup %3263  ;;  %3277 = vrcp.f32 %v1913_v36 }
 0x453   : > { %2864 = vmatprep.mubr.bf16.mxu1 %v1950_v60  ;;  %v1939_v38 = vmul.f32 %v3264_v25, %v4307_v46  ;;  %v3266_v44 = vpop.eup %3265 }
 0x454   : > { %v1915_v37 = vpop.xlane.xlu1 %1914  ;;  %v1940_v35 = vmul.f32 %v3266_v44, %v4305_v31 }
 0x455   : > { %3279 = vrcp.f32 %v1915_v37  ;;  %v1951_v30 = vpack.c.bf16 %v1939_v38, %v1938_v43 }
 0x456   : > { %v3268_v59 = vpop.eup %3267 }
 0x457   : > { %2865 = vmatmul.mubr.bf16.gmra.mxu1 %v1951_v30  ;;  %v1941_v28 = vmul.f32 %v3268_v59, %v4313_v55  ;;  %v3270_v49 = vpop.eup %3269 }
 0x458   : > { %v1942_v21 = vmul.f32 %v3270_v49, %v4311_v11  ;;  %v3123_v11 = vld [vmem:[#allocation8 + $0x10] ss:$8 sps:$4 sm:$0xff]  }
 0x459   : > { %v1952_v48 = vpack.c.bf16 %v1941_v28, %v1940_v35 }
 0x45a   : > { %v3272_v45 = vpop.eup %3271 }
 0x45b   : > { %2868 = vmatprep.mubr.bf16.mxu1 %v1952_v48  ;;  %v1943_v6 = vmul.f32 %v3272_v45, %v4319_v50  ;;  %v3274_v56 = vpop.eup %3273  ;;  %v3125_v50 = vld [vmem:[#allocation8 + $0x14] ss:$8 sps:$4 sm:$0xff]  }
 0x45c   : > { %v1944_v57 = vmul.f32 %v3274_v56, %v4317_v47  ;;  %2285 = vmatprep.subr.bf16.mxu0 %v3125_v50  ;;  %v3131_v47 = vld [vmem:[#allocation8 + $0xf4] ss:$8 sps:$4 sm:$0xff]  }
 0x45d   : > { %v1953_v7 = vpack.c.bf16 %v1943_v6, %v1942_v21  ;;  %2286 = vmatpush1.bf16.msra.mxu0 %v3123_v11 }
 0x45e   : > { %v3276_v46 = vpop.eup %3275  ;;  %2287 = vmatprep.subr.bf16.mxu0 %v3128_v0 }
 0x45f   : > { %v3278_v61 = vpop.eup %3277  ;;  %2869 = vmatmul.mubr.bf16.gmra.mxu1 %v1953_v7  ;;  %v1945_v8 = vmul.f32 %v3276_v46, %v4325_v41  ;;  %v3134_v41 = vld [vmem:[#allocation8 + $0xe4] ss:$8 sps:$4 sm:$0xff]  }
 0x460   : > { %v1946_v55 = vmul.f32 %v3278_v61, %v4323_v23  ;;  %v3137_v23 = vld [vmem:[#allocation8 + $0xd4] ss:$8 sps:$4 sm:$0xff]  }
 0x461   : > { %v1954_v10 = vpack.c.bf16 %v1945_v8, %v1944_v57  ;;  %2288 = vmatpush1.bf16.msra.mxu0 %v3126_v54 }
 0x462   : > { %v3280_v31 = vpop.eup %3279  ;;  %2289 = vmatprep.subr.bf16.mxu0 %v3131_v47  ;;  %v2101_v47 = vld [vmem:[%s4512_s4] sm:$0x3] }
 0x463   : > { %v1947_v51 = vmul.f32 %v3280_v31, %v4329_v2  ;;  %2872 = vmatprep.mubr.bf16.mxu1 %v1954_v10  ;;  %v3135_v2 = vld [vmem:[#allocation8 + $0xd0] ss:$8 sps:$4 sm:$0xff]  }
 0x465   : > { %v1955_v53 = vpack.c.bf16 %v1947_v51, %v1946_v55  ;;  %2290 = vmatpush2.bf16.msra.mxu0 %v3129_v27  ;;  %v4601_v27 = vld [vmem:[#allocation15_spill] sm:$0xff] }
 0x466   : > { %2291 = vmatprep.subr.bf16.mxu0 %v3134_v41  ;;  %v4602_v41 = vsub.s32 0, %v4601_v27 }
 0x467   : > { %2873 = vmatmul.mubr.bf16.gmra.mxu1 %v1955_v53 }
 0x469   : > { %2292 = vmatpush2.bf16.msra.mxu0 %v3132_v34  ;;  %v4384_v34 = vrot.slane %v2101_v47, %v4602_v41 }
 0x46a   : > { %2293 = vmatprep.subr.bf16.mxu0 %v3137_v23  ;;  %v4603_v23 = vsub.s32 1, %v4601_v27 }
 0x46d   : > { %2294 = vmatpush2.bf16.msra.mxu0 %v3135_v2  ;;  %v4388_v2 = vrot.slane %v2101_v47, %v4603_v23 }
 0x46e   : > { %2295 = vmatprep.subr.bf16.mxu0 %v3140_v1 }
 0x471   : > { %2296 = vmatpush2.bf16.msra.mxu0 %v3138_v32 }
 0x472   : > { %2297 = vmatprep.subr.bf16.mxu0 %v3143_v12 }
 0x475   : > { %2298 = vmatpush2.bf16.msra.mxu0 %v3141_v63 }
 0x476   : > { %2299 = vmatprep.subr.bf16.mxu0 %v3146_v16 }
 0x479   : > { %2300 = vmatpush2.bf16.msra.mxu0 %v3144_v58 }
 0x47a   : > { %2301 = vmatprep.subr.bf16.mxu0 %v3149_v14 }
 0x47d   : > { %2302 = vmatpush2.bf16.msra.mxu0 %v3147_v17 }
 0x47e   : > { %2303 = vmatprep.subr.bf16.mxu0 %v3152_v18 }
 0x481   : > { %2304 = vmatpush2.bf16.msra.mxu0 %v3150_v19 }
 0x4ee   : > { %v2798_v29 = vpop.f32.mrf.mxu1 }
 0x4f0   : > { %v1644_v24 = vpop.f32.mrf.mxu1 }
 0x4f2   : > { %v2799_v4 = vpop.f32.mrf.mxu1 }
 0x4f3   : > { %v2055_v49 = vpack.c.bf16 %v2799_v4, %v2798_v29 }
 0x4f4   : > { %v1647_v9 = vpop.f32.mrf.mxu1 }
 0x4f5   : > { %v2053_v38 = vpack.c.bf16 %v1647_v9, %v1644_v24 }
 0x4f7   : > { %v2802_v26 = vpop.f32.mrf.mxu1 }
 0x4f9   : > { %v1660_v42 = vpop.f32.mrf.mxu1 }
 0x4fb   : > { %v2803_v62 = vpop.f32.mrf.mxu1 }
 0x4fc   : > { %v2059_v61 = vpack.c.bf16 %v2803_v62, %v2802_v26 }
 0x4fd   : > { %v1663_v20 = vpop.f32.mrf.mxu1 }
 0x4fe   : > { %v2057_v6 = vpack.c.bf16 %v1663_v20, %v1660_v42 }
 0x4ff   : > { %v2806_v22 = vpop.f32.mrf.mxu1 }
 0x501   : > { %v1676_v52 = vpop.f32.mrf.mxu1 }
 0x503   : > { %v2807_v3 = vpop.f32.mrf.mxu1 }
 0x504   : > { %v2063_v11 = vpack.c.bf16 %v2807_v3, %v2806_v22 }
 0x505   : > { %v1679_v5 = vpop.f32.mrf.mxu1 }
 0x506   : > { %v2061_v10 = vpack.c.bf16 %v1679_v5, %v1676_v52 }
 0x507   : > { %v2810_v13 = vpop.f32.mrf.mxu1 }
 0x509   : > { %v1692_v36 = vpop.f32.mrf.mxu1 }
 0x50b   : > { %v2811_v40 = vpop.f32.mrf.mxu1 }
 0x50c   : > { %v2067_v39 = vpack.c.bf16 %v2811_v40, %v2810_v13 }
 0x50d   : > { %v1695_v33 = vpop.f32.mrf.mxu1 }
 0x50e   : > { %v2065_v0 = vpack.c.bf16 %v1695_v33, %v1692_v36 }
 0x50f   : > { %v2862_v15 = vpop.f32.mrf.mxu1 }
 0x511   : > { %v1990_v60 = vpop.f32.mrf.mxu1 }
 0x513   : > { %v2863_v25 = vpop.f32.mrf.mxu1 }
 0x514   : > { %v2056_v30 = vpack.c.bf16 %v2863_v25, %v2862_v15 }
 0x515   : > { %v1993_v37 = vpop.f32.mrf.mxu1 }
 0x516   : > { %v2054_v43 = vpack.c.bf16 %v1993_v37, %v1990_v60 }
 0x517   : > { %v2866_v44 = vpop.f32.mrf.mxu1 }
 0x518   : > { %2305 = vmatprep.mubr.bf16.mxu0 %v2054_v43 }
 0x519   : > { %v2006_v59 = vpop.f32.mrf.mxu1  ;;  %2306 = vmatmul.mubr.bf16.vlgmr.msra.gmra.mxu0 %v2053_v38 }
 0x51a   : > { %2315 = vmatprep.mubr.bf16.mxu0 %v2056_v30 }
 0x51b   : > { %v2867_v35 = vpop.f32.mrf.mxu1 }
 0x51c   : > { %v2060_v56 = vpack.c.bf16 %v2867_v35, %v2866_v44 }
 0x51d   : > { %v2009_v28 = vpop.f32.mrf.mxu1 }
 0x51e   : > { %v2058_v48 = vpack.c.bf16 %v2009_v28, %v2006_v59 }
 0x51f   : > { %v2870_v45 = vpop.f32.mrf.mxu1 }
 0x521   : > { %2316 = vmatmul.mubr.bf16.gmra.mxu0 %v2055_v49  ;;  %v2022_v21 = vpop.f32.mrf.mxu1 }
 0x522   : > { %2325 = vmatprep.mubr.bf16.mxu0 %v2058_v48 }
 0x523   : > { %v2871_v7 = vpop.f32.mrf.mxu1 }
 0x524   : > { %v2064_v55 = vpack.c.bf16 %v2871_v7, %v2870_v45 }
 0x525   : > { %v2025_v46 = vpop.f32.mrf.mxu1 }
 0x526   : > { %v2062_v57 = vpack.c.bf16 %v2025_v46, %v2022_v21 }
 0x527   : > { %v2874_v8 = vpop.f32.mrf.mxu1 }
 0x529   : > { %2326 = vmatmul.mubr.bf16.gmra.mxu0 %v2057_v6  ;;  %v2038_v31 = vpop.f32.mrf.mxu1 }
 0x52a   : > { %2335 = vmatprep.mubr.bf16.mxu0 %v2060_v56 }
 0x52b   : > { %v2875_v51 = vpop.f32.mrf.mxu1 }
 0x52c   : > { %v2068_v54 = vpack.c.bf16 %v2875_v51, %v2874_v8 }
 0x52d   : > { %v2041_v53 = vpop.f32.mrf.mxu1 }
 0x52e   : > { %v2066_v50 = vpack.c.bf16 %v2041_v53, %v2038_v31 }
 0x531   : > { %2336 = vmatmul.mubr.bf16.gmra.mxu0 %v2059_v61 }
 0x532   : > { %2345 = vmatprep.mubr.bf16.mxu0 %v2062_v57 }
 0x539   : > { %2346 = vmatmul.mubr.bf16.gmra.mxu0 %v2061_v10 }
 0x53a   : > { %2355 = vmatprep.mubr.bf16.mxu0 %v2064_v55 }
 0x541   : > { %2356 = vmatmul.mubr.bf16.gmra.mxu0 %v2063_v11 }
 0x542   : > { %2365 = vmatprep.mubr.bf16.mxu0 %v2066_v50 }
 0x549   : > { %2366 = vmatmul.mubr.bf16.gmra.mxu0 %v2065_v0 }
 0x54a   : > { %2375 = vmatprep.mubr.bf16.mxu0 %v2068_v54 }
 0x551   : > { %2376 = vmatmul.mubr.bf16.gmra.mxu0 %v2067_v39 }
 0x5d9   : > { %v2307_v1 = vpop.f32.mrf.mxu0 }
 0x5da   : > { %v2308_v32 = vadd.f32 %v2307_v1, %v4384_v34 }
 0x5db   : > { %v2309_v12 = vpop.f32.mrf.mxu0 }
 0x5dc   : > { %2386 = vst [vmem:[%s4393_s15] sm:$0xff] %v2308_v32  ;;  %v2310_v63 = vadd.f32 %v2309_v12, %v4388_v2 }
 0x5dd   : > { %v2311_v16 = vpop.f32.mrf.mxu0 }
 0x5de   : > { %2387 = vst [vmem:[%s4393_s15 + $0x8] sm:$0xff] %v2310_v63  ;;  %v2312_v58 = vadd.f32 %v2311_v16, %v4384_v34 }
 0x5df   : > { %v2313_v14 = vpop.f32.mrf.mxu0 }
 0x5e0   : > { %2388 = vst [vmem:[%s4393_s15 + $0x10] sm:$0xff] %v2312_v58  ;;  %v2314_v17 = vadd.f32 %v2313_v14, %v4388_v2 }
 0x5e1   : > { %v2317_v18 = vpop.f32.mrf.mxu0 }
 0x5e2   : > { %2389 = vst [vmem:[%s4393_s15 + $0x18] sm:$0xff] %v2314_v17  ;;  %v2318_v19 = vadd.f32 %v2317_v18, %v4384_v34 }
 0x5e3   : > { %v2319_v29 = vpop.f32.mrf.mxu0 }
 0x5e4   : > { %2390 = vst [vmem:[%s4393_s15 + $0x20] sm:$0xff] %v2318_v19  ;;  %v2320_v24 = vadd.f32 %v2319_v29, %v4388_v2 }
 0x5e5   : > { %v2321_v4 = vpop.f32.mrf.mxu0 }
 0x5e6   : > { %2391 = vst [vmem:[%s4393_s15 + $0x28] sm:$0xff] %v2320_v24  ;;  %v2322_v9 = vadd.f32 %v2321_v4, %v4384_v34 }
 0x5e7   : > { %v2323_v26 = vpop.f32.mrf.mxu0 }
 0x5e8   : > { %2392 = vst [vmem:[%s4393_s15 + $0x30] sm:$0xff] %v2322_v9  ;;  %v2324_v42 = vadd.f32 %v2323_v26, %v4388_v2 }
 0x5e9   : > { %v2327_v62 = vpop.f32.mrf.mxu0 }
 0x5ea   : > { %2393 = vst [vmem:[%s4393_s15 + $0x38] sm:$0xff] %v2324_v42  ;;  %v2328_v20 = vadd.f32 %v2327_v62, %v4384_v34 }
 0x5eb   : > { %v2329_v22 = vpop.f32.mrf.mxu0 }
 0x5ec   : > { %2394 = vst [vmem:[%s4393_s15 + $0x40] sm:$0xff] %v2328_v20  ;;  %v2330_v52 = vadd.f32 %v2329_v22, %v4388_v2 }
 0x5ed   : > { %v2331_v3 = vpop.f32.mrf.mxu0 }
 0x5ee   : > { %2395 = vst [vmem:[%s4393_s15 + $0x48] sm:$0xff] %v2330_v52  ;;  %v2332_v5 = vadd.f32 %v2331_v3, %v4384_v34 }
 0x5ef   : > { %v2333_v13 = vpop.f32.mrf.mxu0 }
 0x5f0   : > { %2396 = vst [vmem:[%s4393_s15 + $0x50] sm:$0xff] %v2332_v5  ;;  %v2334_v36 = vadd.f32 %v2333_v13, %v4388_v2 }
 0x5f1   : > { %v2337_v40 = vpop.f32.mrf.mxu0 }
 0x5f2   : > { %2397 = vst [vmem:[%s4393_s15 + $0x58] sm:$0xff] %v2334_v36  ;;  %v2338_v39 = vadd.f32 %v2337_v40, %v4384_v34 }
 0x5f3   : > { %v2339_v33 = vpop.f32.mrf.mxu0 }
 0x5f4   : > { %2398 = vst [vmem:[%s4393_s15 + $0x60] sm:$0xff] %v2338_v39  ;;  %v2340_v15 = vadd.f32 %v2339_v33, %v4388_v2 }
 0x5f5   : > { %v2341_v60 = vpop.f32.mrf.mxu0 }
 0x5f6   : > { %2399 = vst [vmem:[%s4393_s15 + $0x68] sm:$0xff] %v2340_v15  ;;  %v2342_v25 = vadd.f32 %v2341_v60, %v4384_v34 }
 0x5f7   : > { %v2343_v37 = vpop.f32.mrf.mxu0 }
 0x5f8   : > { %2400 = vst [vmem:[%s4393_s15 + $0x70] sm:$0xff] %v2342_v25  ;;  %v2344_v43 = vadd.f32 %v2343_v37, %v4388_v2 }
 0x5f9   : > { %v2347_v38 = vpop.f32.mrf.mxu0 }
 0x5fa   : > { %2401 = vst [vmem:[%s4393_s15 + $0x78] sm:$0xff] %v2344_v43  ;;  %v2348_v44 = vadd.f32 %v2347_v38, %v4384_v34 }
 0x5fb   : > { %v2349_v30 = vpop.f32.mrf.mxu0 }
 0x5fc   : > { %2402 = vst [vmem:[%s4393_s15 + $0x80] sm:$0xff] %v2348_v44  ;;  %v2350_v59 = vadd.f32 %v2349_v30, %v4388_v2 }
 0x5fd   : > { %v2351_v35 = vpop.f32.mrf.mxu0 }
 0x5fe   : > { %2403 = vst [vmem:[%s4393_s15 + $0x88] sm:$0xff] %v2350_v59  ;;  %v2352_v28 = vadd.f32 %v2351_v35, %v4384_v34 }
 0x5ff   : > { %v2353_v49 = vpop.f32.mrf.mxu0 }
 0x600   : > { %2404 = vst [vmem:[%s4393_s15 + $0x90] sm:$0xff] %v2352_v28  ;;  %v2354_v48 = vadd.f32 %v2353_v49, %v4388_v2 }
 0x601   : > { %v2357_v45 = vpop.f32.mrf.mxu0 }
 0x602   : > { %2405 = vst [vmem:[%s4393_s15 + $0x98] sm:$0xff] %v2354_v48  ;;  %v2358_v21 = vadd.f32 %v2357_v45, %v4384_v34 }
 0x603   : > { %v2359_v6 = vpop.f32.mrf.mxu0 }
 0x604   : > { %2406 = vst [vmem:[%s4393_s15 + $0xa0] sm:$0xff] %v2358_v21  ;;  %v2360_v56 = vadd.f32 %v2359_v6, %v4388_v2 }
 0x605   : > { %v2361_v7 = vpop.f32.mrf.mxu0 }
 0x606   : > { %2407 = vst [vmem:[%s4393_s15 + $0xa8] sm:$0xff] %v2360_v56  ;;  %v2362_v46 = vadd.f32 %v2361_v7, %v4384_v34 }
 0x607   : > { %v2363_v61 = vpop.f32.mrf.mxu0 }
 0x608   : > { %2408 = vst [vmem:[%s4393_s15 + $0xb0] sm:$0xff] %v2362_v46  ;;  %v2364_v57 = vadd.f32 %v2363_v61, %v4388_v2 }
 0x609   : > { %v2367_v8 = vpop.f32.mrf.mxu0 }
 0x60a   : > { %2409 = vst [vmem:[%s4393_s15 + $0xb8] sm:$0xff] %v2364_v57  ;;  %v2368_v31 = vadd.f32 %v2367_v8, %v4384_v34 }
 0x60b   : > { %v2369_v10 = vpop.f32.mrf.mxu0 }
 0x60c   : > { %2410 = vst [vmem:[%s4393_s15 + $0xc0] sm:$0xff] %v2368_v31  ;;  %v2370_v55 = vadd.f32 %v2369_v10, %v4388_v2 }
 0x60d   : > { %v2371_v51 = vpop.f32.mrf.mxu0 }
 0x60e   : > { %2411 = vst [vmem:[%s4393_s15 + $0xc8] sm:$0xff] %v2370_v55  ;;  %v2372_v53 = vadd.f32 %v2371_v51, %v4384_v34 }
 0x60f   : > { %v2373_v11 = vpop.f32.mrf.mxu0 }
 0x610   : > { %2412 = vst [vmem:[%s4393_s15 + $0xd0] sm:$0xff] %v2372_v53  ;;  %v2374_v50 = vadd.f32 %v2373_v11, %v4388_v2 }
 0x611   : > { %v2377_v0 = vpop.f32.mrf.mxu0 }
 0x612   : > { %2413 = vst [vmem:[%s4393_s15 + $0xd8] sm:$0xff] %v2374_v50  ;;  %v2378_v54 = vadd.f32 %v2377_v0, %v4384_v34 }
 0x613   : > { %v2379_v47 = vpop.f32.mrf.mxu0 }
 0x614   : > { %2414 = vst [vmem:[%s4393_s15 + $0xe0] sm:$0xff] %v2378_v54  ;;  %v2380_v27 = vadd.f32 %v2379_v47, %v4388_v2 }
 0x615   : > { %v2381_v41 = vpop.f32.mrf.mxu0 }
 0x616   : > { %2415 = vst [vmem:[%s4393_s15 + $0xe8] sm:$0xff] %v2380_v27  ;;  %v2382_v23 = vadd.f32 %v2381_v41, %v4384_v34 }
 0x617   : > { %v2383_v1 = vpop.f32.mrf.mxu0 }
 0x618   : > { %2416 = vst [vmem:[%s4393_s15 + $0xf0] sm:$0xff] %v2382_v23  ;;  %v2384_v32 = vadd.f32 %v2383_v1, %v4388_v2 }
 0x61a   : > { %2417 = vst [vmem:[%s4393_s15 + $0xf8] sm:$0xff] %v2384_v32 }
 0x61b   : > { %3400 = shalt.err (!%p3397_p9)
}
 0x61c   : > { %s3401_s9 = scalar_lea.hbm %s4460_s13, 4096  ;;  %s3405_s24 = scalar_lea.hbm %s4513_s5, 8192 }
 0x61d   : > { %p3402_p1 = scmp.ne.s32.totalorder %s4460_s13, %s3401_s9  ;;  %p3406_p11 = scmp.lt.s32.totalorder %s4460_s13, %s4513_s5 }
 0x61e   : > { %p3407_p13 = scmp.lt.s32.totalorder %s3405_s24, %s3401_s9 }
 0x61f   : > { %p3403_p8 = pnand %p3402_p1, %p4604_p6 }
 0x620   : > { %p3408_p2 = por %p3407_p13, %p3406_p11 }
 0x621   : > { %p3404_p10 = pneg %p3403_p8 }
 0x623   : > { %p3409_p4 = pnand %p3408_p2, %p3404_p10 }
 0x625   : > { %3412 = shalt.err (!%p3409_p4)
}
 0x626   : > { %s3472_s17 = smov 256   ;;  %s3473_s27 = smov 16  }
 0x627   : > { %2890 = dma.vmem_to_hbm [thread:$0]  (%p4604_p6), %s4462_s23, 4096, %s4460_s13, %s2419_s22, %s3472_s17, %s3472_s17, %s3473_s27  }
 0x628 PF: > { %s2447_s29 = sand.u32 1, %s3447_s18   ;;  %p4605_p12 = scmp.ne.s32.totalorder %s4540_s25, 0 }
 0x629   : > { %p4606_p0 = scmp.ge.s32.totalorder %s3459_s21, 2  ;;  %s2448_s14 = scalar_lea.sflag [#allocation4], %s2447_s29 }
 0x62b   : > { %p2907_p5 = pnand %p4606_p0, %p4605_p12 }
 0x62d   : > { %p2908_p3 = pneg %p2907_p5 }
 0x62f   : > { %3442 = dma.done.wait (%p2908_p3), %s2448_s14, 4096  }
 0x630   : > { %3444 = vsyncadd (%p2908_p3), %s2448_s14, 4294963200  ;;  %p20_p7 = scmp.ge.s32.totalorder %s3584_s6, 4   ;;  %s4607_s18 = smov %s3451_s19 }
 0x631   : > { %s4608_s19 = smov %s3455_s20  ;;  %s4609_s20 = smov %s3594_s10 }
 0x632   : > { %s4610_s21 = smov %s3584_s6  ;;  %22 = sbr.rel (!%p20_p7) target bundleno = 7 (0x7), region = 97 }
 0x637   :  { %2453 = vsyncpa [#allocation3], 1 }
 0x638   :  { %2455 = vsyncpa [#allocation3 + $0x1], 1 }
 0x639   :  { %2456 = vsyncpa [#allocation6], 1 }
 0x63a   :  { %2457 = vsyncpa [#allocation9], 1 }
 0x63b   :  { %2458 = vsyncpa [#allocation4], 1 }
 0x63c   :  { %2460 = vsyncpa [#allocation4 + $0x1], 1 }

</bundles_post_ra>
